<compile_context>
chip_gen: v7x
topology: tpu7x:2x2x1
jax: 0.10.0
libtpu: 0.0.40
codegen_flags: <defaults>
</compile_context>

<pallas_src>
import functools

import jax
import jax.numpy as jnp
import numpy as np
from jax.experimental import pallas as pl
from jax.experimental.pallas import tpu as pltpu

_LANE = 128
_MIN_GRID_STEPS = 4          # >= 2 steps per TensorCore (v7x has 2) + pipelining headroom


def _round_up(x, m):
    return ((x + m - 1) // m) * m


@functools.lru_cache(maxsize=None)
def _tpu_budget():
    """(max M-tile, vmem_limit_bytes), generation-aware.

    v5e/v6e: 128 MiB physical VMEM -> larger tiles / scoped limit.
    v7x (64 MiB) or unknown hardware -> conservative caps."""
    vmem_bytes = 64 << 20
    try:
        info = pltpu.get_tpu_info()
        vmem_bytes = int(getattr(info, "vmem_capacity_bytes", vmem_bytes) or vmem_bytes)
    except Exception:
        pass
    if vmem_bytes >= (96 << 20):       # v5e / v6e
        return 1024, 64 << 20
    return 512, 32 << 20               # v7x or unknown


def _cparams(semantics):
    _, vmem_limit = _tpu_budget()
    return pltpu.CompilerParams(dimension_semantics=semantics,
                                vmem_limit_bytes=vmem_limit)


# -----------------------------------------------------------------------------
# Pallas kernels
# -----------------------------------------------------------------------------
def _mm_kernel(*refs, relu6, has_res):
    """One M-tile of: out = act(X @ W + bias) [+ residual].

    X/W are bf16 (native MXU rate); accumulation + epilogue in f32.  relu6 and the
    residual add are mutually exclusive (MobileNetV2 projection is linear)."""
    if has_res:
        x_ref, w_ref, b_ref, r_ref, o_ref = refs
    else:
        x_ref, w_ref, b_ref, o_ref = refs
    acc = jnp.dot(x_ref[...], w_ref[...], preferred_element_type=jnp.float32)
    y = acc + b_ref[...]
    if relu6:
        y = jnp.clip(y, 0.0, 6.0)
    if has_res:
        y = y + r_ref[...].astype(jnp.float32)
    o_ref[...] = y.astype(o_ref.dtype)


def _dw_s1_kernel(x_ref, w_ref, b_ref, o_ref, xpad):
    """Depthwise 3x3, stride 1, pad 1.  Halo is built in VMEM scratch (no HBM pad pass).

    x_ref: (1, H, W, TC) bf16 ; w_ref: (3, 3, TC) f32 (BN scale folded);
    b_ref: (1, TC) f32 ; o_ref: (1, H, W, TC) ; xpad: (H+2, W+2, TC) f32 scratch."""
    H, W = o_ref.shape[1], o_ref.shape[2]
    # Zero every step (cheap, VMEM-only) so correctness does not depend on scratch
    # persistence when the parallel grid is sharded across TensorCores.
    xpad[...] = jnp.zeros_like(xpad)
    # Single hoisted bf16 -> f32 cast; taps below slice the f32 scratch.
    xpad[1:H + 1, 1:W + 1, :] = x_ref[0].astype(jnp.float32)
    w = w_ref[...]
    acc = None
    for kh in range(3):
        for kw in range(3):
            tap = xpad[kh:kh + H, kw:kw + W, :] * w[kh, kw]
            acc = tap if acc is None else acc + tap
    o_ref[0] = jnp.clip(acc + b_ref[0, :], 0.0, 6.0).astype(o_ref.dtype)


def _dw_s2_kernel(xee_ref, xeo_ref, xoe_ref, xoo_ref, w_ref, b_ref, o_ref):
    """Depthwise 3x3, stride 2, pad 1: only the strided output positions are computed.

    The UNPADDED input was parity-split in XLA; each parity carries exactly the top/left
    halo it needs, so every access below is a contiguous unit-stride window:
        out[i,j] = sum_{kh,kw} x[2i+kh-1, 2j+kw-1] * w[kh,kw]   (zero outside)."""
    Ho, Wo = o_ref.shape[1], o_ref.shape[2]
    w = w_ref[...]
    # Hoisted bf16 -> f32 casts (one per parity block, not per tap).
    ee = xee_ref[0].astype(jnp.float32)   # (Ho,   Wo,   TC)              x[2i,   2j  ]
    eo = xeo_ref[0].astype(jnp.float32)   # (Ho,   Wo+1, TC) left halo    x[2i,   2j-1]
    oe = xoe_ref[0].astype(jnp.float32)   # (Ho+1, Wo,   TC) top halo     x[2i-1, 2j  ]
    oo = xoo_ref[0].astype(jnp.float32)   # (Ho+1, Wo+1, TC) top+left     x[2i-1, 2j-1]
    acc = (oo[0:Ho, 0:Wo] * w[0, 0] + oe[0:Ho, :] * w[0, 1] + oo[0:Ho, 1:Wo + 1] * w[0, 2]
           + eo[:, 0:Wo] * w[1, 0] + ee * w[1, 1] + eo[:, 1:Wo + 1] * w[1, 2]
           + oo[1:Ho + 1, 0:Wo] * w[2, 0] + oe[1:Ho + 1, :] * w[2, 1]
           + oo[1:Ho + 1, 1:Wo + 1] * w[2, 2])
    o_ref[0] = jnp.clip(acc + b_ref[0, :], 0.0, 6.0).astype(o_ref.dtype)


# -----------------------------------------------------------------------------
# Kernel wrappers
# -----------------------------------------------------------------------------
def matmul_bias_act(x, w, bias, *, relu6, residual=None, out_dtype=jnp.float32):
    """act(x @ w + bias) [+ residual].  x:(M,K), w:(K,Np), bias:(1,Np); K, Np % 128 == 0."""
    M, K = x.shape
    Kw, Np = w.shape
    assert K == Kw and K % _LANE == 0 and Np % _LANE == 0
    assert not (relu6 and residual is not None)   # residual adds to the LINEAR output
    tm_max, _ = _tpu_budget()

    x = x.astype(jnp.bfloat16)
    w = w.astype(jnp.bfloat16)
    bias = bias.astype(jnp.float32)

    # Adaptive M-tile: >= _MIN_GRID_STEPS grid steps, multiple of 16 (bf16 sublane pack),
    # capped by the generation-aware max tile.
    TM = max(16, min(tm_max, _round_up(pl.cdiv(M, _MIN_GRID_STEPS), 16)))
    Mp = _round_up(M, TM)
    if Mp != M:
        x = jnp.pad(x, ((0, Mp - M), (0, 0)))

    # NOTE: W / bias are grid-invariant; `pipeline_mode=pl.Buffered(1)` would reclaim
    # their double-buffer VMEM on v7x — omitted here, irrelevant at these sizes.
    in_specs = [
        pl.BlockSpec((TM, K), lambda i: (i, 0)),
        pl.BlockSpec((K, Np), lambda i: (0, 0)),
        pl.BlockSpec((1, Np), lambda i: (0, 0)),
    ]
    args = [x, w, bias]
    if residual is not None:
        assert residual.shape == (M, Np)
        residual = residual.astype(jnp.bfloat16)       # halves the residual input DMA
        if Mp != M:
            residual = jnp.pad(residual, ((0, Mp - M), (0, 0)))
        in_specs.append(pl.BlockSpec((TM, Np), lambda i: (i, 0)))
        args.append(residual)

    out = pl.pallas_call(
        functools.partial(_mm_kernel, relu6=relu6, has_res=residual is not None),
        out_shape=jax.ShapeDtypeStruct((Mp, Np), out_dtype),
        grid=(Mp // TM,),
        in_specs=in_specs,
        out_specs=pl.BlockSpec((TM, Np), lambda i: (i, 0)),
        compiler_params=_cparams(("parallel",)),
    )(*args)
    return out[:M] if Mp != M else out


def depthwise3x3_bn_relu6(x, w, bias, stride):
    """Depthwise 3x3 conv (pad=1) + folded-BN bias + ReLU6.

    x: (N, H, W, C) bf16 (C % 128 == 0), w: (3, 3, C) f32, bias: (1, C) f32."""
    N, H, W, C = x.shape
    assert C % _LANE == 0
    TC = _LANE

    # TODO(synk): for large spatial inputs also tile H (with a 2-row halo) so per-step
    #             VMEM stays small and the grid stays long enough to pipeline.
    if stride == 1:
        return pl.pallas_call(
            _dw_s1_kernel,
            out_shape=jax.ShapeDtypeStruct((N, H, W, C), x.dtype),
            grid=(N, C // TC),
            in_specs=[
                pl.BlockSpec((1, H, W, TC), lambda n, c: (n, 0, 0, c)),
                pl.BlockSpec((3, 3, TC), lambda n, c: (0, 0, c)),
                pl.BlockSpec((1, TC), lambda n, c: (0, c)),
            ],
            out_specs=pl.BlockSpec((1, H, W, TC), lambda n, c: (n, 0, 0, c)),
            scratch_shapes=[pltpu.VMEM((H + 2, W + 2, TC), jnp.float32)],
            compiler_params=_cparams(("parallel", "parallel")),
        )(x, w, bias)

    assert stride == 2 and H % 2 == 0 and W % 2 == 0
    Ho, Wo = H // 2, W // 2
    # Parity-split the UNPADDED tensor once in XLA; bake the needed top/left halo into
    # each quarter-size parity array (one read + ~one write pass over the hidden tensor,
    # instead of full-pad + slices-of-padded).  Right/bottom halos are never read.
    xee = x[:, 0::2, 0::2, :]
    xeo = jnp.pad(x[:, 0::2, 1::2, :], ((0, 0), (0, 0), (1, 0), (0, 0)))
    xoe = jnp.pad(x[:, 1::2, 0::2, :], ((0, 0), (1, 0), (0, 0), (0, 0)))
    xoo = jnp.pad(x[:, 1::2, 1::2, :], ((0, 0), (1, 0), (1, 0), (0, 0)))
    return pl.pallas_call(
        _dw_s2_kernel,
        out_shape=jax.ShapeDtypeStruct((N, Ho, Wo, C), x.dtype),
        grid=(N, C // TC),
        in_specs=[
            pl.BlockSpec((1, Ho, Wo, TC), lambda n, c: (n, 0, 0, c)),
            pl.BlockSpec((1, Ho, Wo + 1, TC), lambda n, c: (n, 0, 0, c)),
            pl.BlockSpec((1, Ho + 1, Wo, TC), lambda n, c: (n, 0, 0, c)),
            pl.BlockSpec((1, Ho + 1, Wo + 1, TC), lambda n, c: (n, 0, 0, c)),
            pl.BlockSpec((3, 3, TC), lambda n, c: (0, 0, c)),
            pl.BlockSpec((1, TC), lambda n, c: (0, c)),
        ],
        out_specs=pl.BlockSpec((1, Ho, Wo, TC), lambda n, c: (n, 0, 0, c)),
        compiler_params=_cparams(("parallel", "parallel")),
    )(xee, xeo, xoe, xoo, w, bias)


# -----------------------------------------------------------------------------
# Parameter construction (deterministic; eval-mode BN folded into scale/bias)
# -----------------------------------------------------------------------------
def _bn_fold(c, eps=1e-5):
    gamma = jnp.ones((c,), jnp.float32)
    beta = jnp.zeros((c,), jnp.float32)
    running_mean = jnp.zeros((c,), jnp.float32)
    running_var = jnp.ones((c,), jnp.float32)
    scale = gamma / jnp.sqrt(running_var + eps)
    bias = beta - running_mean * scale
    return scale, bias


def init_inverted_residual_params(key, inp, oup, stride, expand_ratio):
    assert stride in (1, 2)
    hidden = int(round(inp * expand_ratio))
    use_res = (stride == 1 and inp == oup)
    cin_p = _round_up(inp, _LANE)
    hid_p = _round_up(hidden, _LANE)
    oup_p = _round_up(oup, _LANE)

    p = dict(inp=inp, oup=oup, stride=stride, expand_ratio=expand_ratio,
             hidden=hidden, use_res=use_res, cin_p=cin_p, hid_p=hid_p, oup_p=oup_p)
    k_pw, k_dw, k_pwl = jax.random.split(key, 3)

    if expand_ratio != 1:
        w = 0.1 * jax.random.normal(k_pw, (hidden, inp), jnp.float32)   # Conv2d(inp, hidden, 1)
        p['ref_pw_w'] = w
        s, b = _bn_fold(hidden)
        w_eff = (w * s[:, None]).T                                      # (inp, hidden), BN scale folded
        p['pw_w'] = (jnp.zeros((cin_p, hid_p), jnp.float32)
                     .at[:inp, :hidden].set(w_eff)).astype(jnp.bfloat16)
        p['pw_b'] = jnp.zeros((1, hid_p), jnp.float32).at[0, :hidden].set(b)
    else:
        assert hid_p == cin_p

    w = 0.1 * jax.random.normal(k_dw, (hidden, 3, 3), jnp.float32)      # depthwise 3x3, groups=hidden
    p['ref_dw_w'] = w
    s, b = _bn_fold(hidden)
    w_eff = jnp.transpose(w * s[:, None, None], (1, 2, 0))              # (3, 3, hidden)
    p['dw_w'] = jnp.zeros((3, 3, hid_p), jnp.float32).at[:, :, :hidden].set(w_eff)
    p['dw_b'] = jnp.zeros((1, hid_p), jnp.float32).at[0, :hidden].set(b)

    w = 0.1 * jax.random.normal(k_pwl, (oup, hidden), jnp.float32)      # Conv2d(hidden, oup, 1)
    p['ref_pwl_w'] = w
    s, b = _bn_fold(oup)
    w_eff = (w * s[:, None]).T                                          # (hidden, oup)
    p['pwl_w'] = (jnp.zeros((hid_p, oup_p), jnp.float32)
                  .at[:hidden, :oup].set(w_eff)).astype(jnp.bfloat16)
    p['pwl_b'] = jnp.zeros((1, oup_p), jnp.float32).at[0, :oup].set(b)
    return p


# -----------------------------------------------------------------------------
# Forward pass (matches InvertedResidual.forward, eval mode)
# -----------------------------------------------------------------------------
def inverted_residual_forward(params, x_nchw):
    N, C, H, W = x_nchw.shape
    assert C == params['inp']
    inp, oup = params['inp'], params['oup']
    cin_p, hid_p, oup_p = params['cin_p'], params['hid_p'], params['oup_p']

    # NCHW -> NHWC (channels on lanes); single bf16 cast at the boundary; zero-pad
    # channels so every kernel operand / store is lane-dense.
    x = jnp.transpose(x_nchw, (0, 2, 3, 1)).astype(jnp.bfloat16)
    x = jnp.pad(x, ((0, 0), (0, 0), (0, 0), (0, cin_p - inp)))
    x2d = x.reshape(N * H * W, cin_p)

    if params['expand_ratio'] != 1:
        # 1x1 expansion conv + BN + ReLU6
        h = matmul_bias_act(x2d, params['pw_w'], params['pw_b'],
                            relu6=True, out_dtype=jnp.bfloat16)
        h = h.reshape(N, H, W, hid_p)
    else:
        h = x                                     # hid_p == cin_p

    # depthwise 3x3 conv + BN + ReLU6 (stride handled directly in the kernels)
    h = depthwise3x3_bn_relu6(h, params['dw_w'], params['dw_b'], params['stride'])
    Ho, Wo = h.shape[1], h.shape[2]

    # 1x1 projection conv + BN; residual add fused into the epilogue (linear output).
    residual = x2d if params['use_res'] else None   # bf16; added in f32 inside the kernel
    y = matmul_bias_act(h.reshape(N * Ho * Wo, hid_p), params['pwl_w'], params['pwl_b'],
                        relu6=False, residual=residual, out_dtype=jnp.float32)
    y = y.reshape(N, Ho, Wo, oup_p)[:, :, :, :oup]
    return jnp.transpose(y, (0, 3, 1, 2))           # back to NCHW


# -----------------------------------------------------------------------------
# Pure-JAX f32 reference (mirrors the PyTorch module in eval mode)
# -----------------------------------------------------------------------------
def _reference_forward(params, x_nchw):
    x = jnp.transpose(x_nchw, (0, 2, 3, 1)).astype(jnp.float32)   # NHWC
    h = x
    if params['expand_ratio'] != 1:
        s, b = _bn_fold(params['hidden'])
        h = jnp.einsum('nhwc,kc->nhwk', h, params['ref_pw_w']) * s + b
        h = jnp.clip(h, 0.0, 6.0)
    s, b = _bn_fold(params['hidden'])
    wd = jnp.transpose(params['ref_dw_w'], (1, 2, 0))[:, :, None, :]   # HWIO (3,3,1,C)
    h = jax.lax.conv_general_dilated(
        h, wd, window_strides=(params['stride'], params['stride']),
        padding=((1, 1), (1, 1)), dimension_numbers=('NHWC', 'HWIO', 'NHWC'),
        feature_group_count=params['hidden'])
    h = jnp.clip(h * s + b, 0.0, 6.0)
    s, b = _bn_fold(params['oup'])
    y = jnp.einsum('nhwc,kc->nhwk', h, params['ref_pwl_w']) * s + b
    y = jnp.transpose(y, (0, 3, 1, 2))
    if params['use_res']:
        y = x_nchw.astype(jnp.float32) + y
    return y


# -----------------------------------------------------------------------------
if __name__ == "__main__":
    root = jax.random.PRNGKey(0)
    k_par, k_inp = jax.random.split(root)

    N, H, W = 2, 16, 16
    configs = [
        # (inp, oup, stride, expand_ratio)
        (4, 4, 1, 4),    # expansion conv + residual connection
        (4, 8, 2, 4),    # expansion conv + stride-2 depthwise (no residual)
        (8, 8, 1, 1),    # expand_ratio == 1 branch (no expansion conv) + residual
    ]
    for i, (inp, oup, stride, t) in enumerate(configs):
        params = init_inverted_residual_params(jax.random.fold_in(k_par, i),
                                               inp, oup, stride, t)
        x = jax.random.normal(jax.random.fold_in(k_inp, i), (N, inp, H, W), jnp.float32)
        fwd = jax.jit(functools.partial(inverted_residual_forward, params))
        y = jax.block_until_ready(fwd(x))
        assert y.shape == (N, oup, H // stride, W // stride), y.shape
        assert bool(jnp.all(jnp.isfinite(y)))
        y_ref = _reference_forward(params, x)
        np.testing.assert_allclose(np.asarray(y), np.asarray(y_ref),
                                   rtol=5e-2, atol=5e-2)
    print("KERNEL_OK")
</pallas_src>

<mosaic_0001>
module attributes {stable_mosaic.version = 11 : i64} {
  func.func @_mm_kernel(%arg0: i32, %arg1: memref<128x128xbf16, #tpu.memory_space<vmem>>, %arg2: memref<128x128xbf16, #tpu.memory_space<vmem>>, %arg3: memref<1x128xf32, #tpu.memory_space<vmem>>, %arg4: memref<128x128xbf16, #tpu.memory_space<vmem>>, %arg5: memref<128x128xf32, #tpu.memory_space<vmem>>) attributes {dimension_semantics = [#tpu.dimension_semantics<parallel>], iteration_bounds = array<i64: 4>, scalar_prefetch = 0 : i64, scratch_operands = 0 : i64, tpu.core_type = #tpu.core_type<tc>, window_params = [{transform_indices = @transform_0, window_bounds = array<i64: 128, 128>}, {pipeline_mode = #tpu.pipeline_mode<synchronous>, transform_indices = @transform_1, window_bounds = array<i64: 128, 128>}, {pipeline_mode = #tpu.pipeline_mode<synchronous>, transform_indices = @transform_2, window_bounds = array<i64: 1, 128>}, {transform_indices = @transform_3, window_bounds = array<i64: 128, 128>}, {transform_indices = @transform_4, window_bounds = array<i64: 128, 128>}]} {
    %c0 = arith.constant 0 : index
    %c0_0 = arith.constant 0 : index
    %0 = vector.load %arg1[%c0, %c0_0] : memref<128x128xbf16, #tpu.memory_space<vmem>>, vector<128x128xbf16>
    %c0_1 = arith.constant 0 : index
    %c0_2 = arith.constant 0 : index
    %1 = vector.load %arg2[%c0_1, %c0_2] : memref<128x128xbf16, #tpu.memory_space<vmem>>, vector<128x128xbf16>
    %cst = arith.constant dense<0.000000e+00> : vector<128x128xf32>
    %2 = tpu.matmul %0, %1, %cst {dimension_numbers = #tpu.dot_dimension_numbers<[1], [0], [0], [1], [0, 0, 1, 1], [], []>} : vector<128x128xbf16>, vector<128x128xbf16>, vector<128x128xf32> -> vector<128x128xf32>
    %c0_3 = arith.constant 0 : index
    %c0_4 = arith.constant 0 : index
    %3 = vector.load %arg3[%c0_3, %c0_4] : memref<1x128xf32, #tpu.memory_space<vmem>>, vector<1x128xf32>
    %4 = vector.broadcast %3 : vector<1x128xf32> to vector<128x128xf32>
    %5 = arith.addf %2, %4 : vector<128x128xf32>
    %c0_5 = arith.constant 0 : index
    %c0_6 = arith.constant 0 : index
    %6 = vector.load %arg4[%c0_5, %c0_6] : memref<128x128xbf16, #tpu.memory_space<vmem>>, vector<128x128xbf16>
    %7 = arith.extf %6 : vector<128x128xbf16> to vector<128x128xf32>
    %8 = arith.addf %5, %7 : vector<128x128xf32>
    %c0_7 = arith.constant 0 : index
    %c0_8 = arith.constant 0 : index
    %9 = vector.load %arg5[%c0_7, %c0_8] : memref<128x128xf32, #tpu.memory_space<vmem>>, vector<128x128xf32>
    tpu.vector_store %arg5[%c0_7, %c0_8], %8 {strides = array<i32>} : memref<128x128xf32, #tpu.memory_space<vmem>>, vector<128x128xf32>,
    return
  }
  func.func @transform_0(%arg0: i32) -> (i32, i32) {
    %c0_i32 = arith.constant 0 : i32
    %c0_i32_0 = arith.constant 0 : i32
    return %arg0, %c0_i32 : i32, i32
  }
  func.func @transform_1(%arg0: i32) -> (i32, i32) {
    %c0_i32 = arith.constant 0 : i32
    %c0_i32_0 = arith.constant 0 : i32
    %c0_i32_1 = arith.constant 0 : i32
    return %c0_i32, %c0_i32_0 : i32, i32
  }
  func.func @transform_2(%arg0: i32) -> (i32, i32) {
    %c0_i32 = arith.constant 0 : i32
    %c0_i32_0 = arith.constant 0 : i32
    %c0_i32_1 = arith.constant 0 : i32
    return %c0_i32, %c0_i32_0 : i32, i32
  }
  func.func @transform_3(%arg0: i32) -> (i32, i32) {
    %c0_i32 = arith.constant 0 : i32
    %c0_i32_0 = arith.constant 0 : i32
    return %arg0, %c0_i32 : i32, i32
  }
  func.func @transform_4(%arg0: i32) -> (i32, i32) {
    %c0_i32 = arith.constant 0 : i32
    %c0_i32_0 = arith.constant 0 : i32
    return %arg0, %c0_i32 : i32, i32
  }
}

module attributes {stable_mosaic.version = 11 : i64} {
  func.func @_mm_kernel(%arg0: i32, %arg1: memref<128x128xbf16, #tpu.memory_space<vmem>>, %arg2: memref<128x128xbf16, #tpu.memory_space<vmem>>, %arg3: memref<1x128xf32, #tpu.memory_space<vmem>>, %arg4: memref<128x128xbf16, #tpu.memory_space<vmem>>) attributes {dimension_semantics = [#tpu.dimension_semantics<parallel>], iteration_bounds = array<i64: 4>, scalar_prefetch = 0 : i64, scratch_operands = 0 : i64, tpu.core_type = #tpu.core_type<tc>, window_params = [{transform_indices = @transform_0, window_bounds = array<i64: 128, 128>}, {pipeline_mode = #tpu.pipeline_mode<synchronous>, transform_indices = @transform_1, window_bounds = array<i64: 128, 128>}, {pipeline_mode = #tpu.pipeline_mode<synchronous>, transform_indices = @transform_2, window_bounds = array<i64: 1, 128>}, {transform_indices = @transform_3, window_bounds = array<i64: 128, 128>}]} {
    %c0 = arith.constant 0 : index
    %c0_0 = arith.constant 0 : index
    %0 = vector.load %arg1[%c0, %c0_0] : memref<128x128xbf16, #tpu.memory_space<vmem>>, vector<128x128xbf16>
    %c0_1 = arith.constant 0 : index
    %c0_2 = arith.constant 0 : index
    %1 = vector.load %arg2[%c0_1, %c0_2] : memref<128x128xbf16, #tpu.memory_space<vmem>>, vector<128x128xbf16>
    %cst = arith.constant dense<0.000000e+00> : vector<128x128xf32>
    %2 = tpu.matmul %0, %1, %cst {dimension_numbers = #tpu.dot_dimension_numbers<[1], [0], [0], [1], [0, 0, 1, 1], [], []>} : vector<128x128xbf16>, vector<128x128xbf16>, vector<128x128xf32> -> vector<128x128xf32>
    %c0_3 = arith.constant 0 : index
    %c0_4 = arith.constant 0 : index
    %3 = vector.load %arg3[%c0_3, %c0_4] : memref<1x128xf32, #tpu.memory_space<vmem>>, vector<1x128xf32>
    %4 = vector.broadcast %3 : vector<1x128xf32> to vector<128x128xf32>
    %5 = arith.addf %2, %4 : vector<128x128xf32>
    %cst_5 = arith.constant 0.000000e+00 : f32
    %cst_6 = arith.constant 6.000000e+00 : f32
    %6 = vector.broadcast %cst_5 : f32 to vector<128x128xf32>
    %7 = arith.maximumf %6, %5 : vector<128x128xf32>
    %8 = vector.broadcast %cst_6 : f32 to vector<128x128xf32>
    %9 = arith.minimumf %8, %7 : vector<128x128xf32>
    %10 = arith.truncf %9 : vector<128x128xf32> to vector<128x128xbf16>
    %c0_7 = arith.constant 0 : index
    %c0_8 = arith.constant 0 : index
    %11 = vector.load %arg4[%c0_7, %c0_8] : memref<128x128xbf16, #tpu.memory_space<vmem>>, vector<128x128xbf16>
    tpu.vector_store %arg4[%c0_7, %c0_8], %10 {strides = array<i32>} : memref<128x128xbf16, #tpu.memory_space<vmem>>, vector<128x128xbf16>,
    return
  }
  func.func @transform_0(%arg0: i32) -> (i32, i32) {
    %c0_i32 = arith.constant 0 : i32
    %c0_i32_0 = arith.constant 0 : i32
    return %arg0, %c0_i32 : i32, i32
  }
  func.func @transform_1(%arg0: i32) -> (i32, i32) {
    %c0_i32 = arith.constant 0 : i32
    %c0_i32_0 = arith.constant 0 : i32
    %c0_i32_1 = arith.constant 0 : i32
    return %c0_i32, %c0_i32_0 : i32, i32
  }
  func.func @transform_2(%arg0: i32) -> (i32, i32) {
    %c0_i32 = arith.constant 0 : i32
    %c0_i32_0 = arith.constant 0 : i32
    %c0_i32_1 = arith.constant 0 : i32
    return %c0_i32, %c0_i32_0 : i32, i32
  }
  func.func @transform_3(%arg0: i32) -> (i32, i32) {
    %c0_i32 = arith.constant 0 : i32
    %c0_i32_0 = arith.constant 0 : i32
    return %arg0, %c0_i32 : i32, i32
  }
}

module attributes {stable_mosaic.version = 11 : i64} {
  func.func @_dw_s1_kernel(%arg0: i32, %arg1: i32, %arg2: memref<1x16x16x128xbf16, #tpu.memory_space<vmem>>, %arg3: memref<3x3x128xf32, #tpu.memory_space<vmem>>, %arg4: memref<1x128xf32, #tpu.memory_space<vmem>>, %arg5: memref<1x16x16x128xbf16, #tpu.memory_space<vmem>>, %arg6: memref<18x18x128xf32, #tpu.memory_space<vmem>>) attributes {dimension_semantics = [#tpu.dimension_semantics<parallel>, #tpu.dimension_semantics<parallel>], iteration_bounds = array<i64: 2, 1>, scalar_prefetch = 0 : i64, scratch_operands = 1 : i64, tpu.core_type = #tpu.core_type<tc>, window_params = [{transform_indices = @transform_0, window_bounds = array<i64: 1, 16, 16, 128>}, {transform_indices = @transform_1, window_bounds = array<i64: 3, 3, 128>}, {transform_indices = @transform_2, window_bounds = array<i64: 1, 128>}, {transform_indices = @transform_3, window_bounds = array<i64: 1, 16, 16, 128>}]} {
    %cst = arith.constant 0.000000e+00 : f32
    %0 = vector.broadcast %cst : f32 to vector<18x18x128xf32>
    %c0 = arith.constant 0 : index
    %c0_0 = arith.constant 0 : index
    %c0_1 = arith.constant 0 : index
    %1 = vector.load %arg6[%c0, %c0_0, %c0_1] : memref<18x18x128xf32, #tpu.memory_space<vmem>>, vector<18x18x128xf32>
    tpu.vector_store %arg6[%c0, %c0_0, %c0_1], %0 {strides = array<i32>} : memref<18x18x128xf32, #tpu.memory_space<vmem>>, vector<18x18x128xf32>,
    %c0_2 = arith.constant 0 : index
    %c0_3 = arith.constant 0 : index
    %c0_4 = arith.constant 0 : index
    %c0_5 = arith.constant 0 : index
    %2 = vector.load %arg2[%c0_2, %c0_3, %c0_4, %c0_5] : memref<1x16x16x128xbf16, #tpu.memory_space<vmem>>, vector<1x16x16x128xbf16>
    %3 = vector.shape_cast %2 : vector<1x16x16x128xbf16> to vector<16x16x128xbf16>
    %4 = arith.extf %3 : vector<16x16x128xbf16> to vector<16x16x128xf32>
    %c1 = arith.constant 1 : index
    %c1_6 = arith.constant 1 : index
    %c0_7 = arith.constant 0 : index
    %5 = vector.load %arg6[%c1, %c1_6, %c0_7] : memref<18x18x128xf32, #tpu.memory_space<vmem>>, vector<16x16x128xf32>
    tpu.vector_store %arg6[%c1, %c1_6, %c0_7], %4 {strides = array<i32>} : memref<18x18x128xf32, #tpu.memory_space<vmem>>, vector<16x16x128xf32>,
    %c0_8 = arith.constant 0 : index
    %c0_9 = arith.constant 0 : index
    %c0_10 = arith.constant 0 : index
    %6 = vector.load %arg3[%c0_8, %c0_9, %c0_10] : memref<3x3x128xf32, #tpu.memory_space<vmem>>, vector<3x3x128xf32>
    %c0_11 = arith.constant 0 : index
    %c0_12 = arith.constant 0 : index
    %c0_13 = arith.constant 0 : index
    %7 = vector.load %arg6[%c0_11, %c0_12, %c0_13] : memref<18x18x128xf32, #tpu.memory_space<vmem>>, vector<16x16x128xf32>
    %8 = vector.extract_strided_slice %6 {offsets = [0, 0, 0], sizes = [1, 1, 128], strides = [1, 1, 1]} : vector<3x3x128xf32> to vector<1x1x128xf32>
    %9 = vector.shape_cast %8 : vector<1x1x128xf32> to vector<128xf32>
    %10 = vector.shape_cast %9 : vector<128xf32> to vector<1x1x128xf32>
    %11 = vector.broadcast %10 : vector<1x1x128xf32> to vector<16x16x128xf32>
    %12 = arith.mulf %7, %11 : vector<16x16x128xf32>
    %c0_14 = arith.constant 0 : index
    %c1_15 = arith.constant 1 : index
    %c0_16 = arith.constant 0 : index
    %13 = vector.load %arg6[%c0_14, %c1_15, %c0_16] : memref<18x18x128xf32, #tpu.memory_space<vmem>>, vector<16x16x128xf32>
    %14 = vector.extract_strided_slice %6 {offsets = [0, 1, 0], sizes = [1, 1, 128], strides = [1, 1, 1]} : vector<3x3x128xf32> to vector<1x1x128xf32>
    %15 = vector.shape_cast %14 : vector<1x1x128xf32> to vector<128xf32>
    %16 = vector.shape_cast %15 : vector<128xf32> to vector<1x1x128xf32>
    %17 = vector.broadcast %16 : vector<1x1x128xf32> to vector<16x16x128xf32>
    %18 = arith.mulf %13, %17 : vector<16x16x128xf32>
    %19 = arith.addf %12, %18 : vector<16x16x128xf32>
    %c0_17 = arith.constant 0 : index
    %c2 = arith.constant 2 : index
    %c0_18 = arith.constant 0 : index
    %20 = vector.load %arg6[%c0_17, %c2, %c0_18] : memref<18x18x128xf32, #tpu.memory_space<vmem>>, vector<16x16x128xf32>
    %21 = vector.extract_strided_slice %6 {offsets = [0, 2, 0], sizes = [1, 1, 128], strides = [1, 1, 1]} : vector<3x3x128xf32> to vector<1x1x128xf32>
    %22 = vector.shape_cast %21 : vector<1x1x128xf32> to vector<128xf32>
    %23 = vector.shape_cast %22 : vector<128xf32> to vector<1x1x128xf32>
    %24 = vector.broadcast %23 : vector<1x1x128xf32> to vector<16x16x128xf32>
    %25 = arith.mulf %20, %24 : vector<16x16x128xf32>
    %26 = arith.addf %19, %25 : vector<16x16x128xf32>
    %c1_19 = arith.constant 1 : index
    %c0_20 = arith.constant 0 : index
    %c0_21 = arith.constant 0 : index
    %27 = vector.load %arg6[%c1_19, %c0_20, %c0_21] : memref<18x18x128xf32, #tpu.memory_space<vmem>>, vector<16x16x128xf32>
    %28 = vector.extract_strided_slice %6 {offsets = [1, 0, 0], sizes = [1, 1, 128], strides = [1, 1, 1]} : vector<3x3x128xf32> to vector<1x1x128xf32>
    %29 = vector.shape_cast %28 : vector<1x1x128xf32> to vector<128xf32>
    %30 = vector.shape_cast %29 : vector<128xf32> to vector<1x1x128xf32>
    %31 = vector.broadcast %30 : vector<1x1x128xf32> to vector<16x16x128xf32>
    %32 = arith.mulf %27, %31 : vector<16x16x128xf32>
    %33 = arith.addf %26, %32 : vector<16x16x128xf32>
    %c1_22 = arith.constant 1 : index
    %c1_23 = arith.constant 1 : index
    %c0_24 = arith.constant 0 : index
    %34 = vector.load %arg6[%c1_22, %c1_23, %c0_24] : memref<18x18x128xf32, #tpu.memory_space<vmem>>, vector<16x16x128xf32>
    %35 = vector.extract_strided_slice %6 {offsets = [1, 1, 0], sizes = [1, 1, 128], strides = [1, 1, 1]} : vector<3x3x128xf32> to vector<1x1x128xf32>
    %36 = vector.shape_cast %35 : vector<1x1x128xf32> to vector<128xf32>
    %37 = vector.shape_cast %36 : vector<128xf32> to vector<1x1x128xf32>
    %38 = vector.broadcast %37 : vector<1x1x128xf32> to vector<16x16x128xf32>
    %39 = arith.mulf %34, %38 : vector<16x16x128xf32>
    %40 = arith.addf %33, %39 : vector<16x16x128xf32>
    %c1_25 = arith.constant 1 : index
    %c2_26 = arith.constant 2 : index
    %c0_27 = arith.constant 0 : index
    %41 = vector.load %arg6[%c1_25, %c2_26, %c0_27] : memref<18x18x128xf32, #tpu.memory_space<vmem>>, vector<16x16x128xf32>
    %42 = vector.extract_strided_slice %6 {offsets = [1, 2, 0], sizes = [1, 1, 128], strides = [1, 1, 1]} : vector<3x3x128xf32> to vector<1x1x128xf32>
    %43 = vector.shape_cast %42 : vector<1x1x128xf32> to vector<128xf32>
    %44 = vector.shape_cast %43 : vector<128xf32> to vector<1x1x128xf32>
    %45 = vector.broadcast %44 : vector<1x1x128xf32> to vector<16x16x128xf32>
    %46 = arith.mulf %41, %45 : vector<16x16x128xf32>
    %47 = arith.addf %40, %46 : vector<16x16x128xf32>
    %c2_28 = arith.constant 2 : index
    %c0_29 = arith.constant 0 : index
    %c0_30 = arith.constant 0 : index
    %48 = vector.load %arg6[%c2_28, %c0_29, %c0_30] : memref<18x18x128xf32, #tpu.memory_space<vmem>>, vector<16x16x128xf32>
    %49 = vector.extract_strided_slice %6 {offsets = [2, 0, 0], sizes = [1, 1, 128], strides = [1, 1, 1]} : vector<3x3x128xf32> to vector<1x1x128xf32>
    %50 = vector.shape_cast %49 : vector<1x1x128xf32> to vector<128xf32>
    %51 = vector.shape_cast %50 : vector<128xf32> to vector<1x1x128xf32>
    %52 = vector.broadcast %51 : vector<1x1x128xf32> to vector<16x16x128xf32>
    %53 = arith.mulf %48, %52 : vector<16x16x128xf32>
    %54 = arith.addf %47, %53 : vector<16x16x128xf32>
    %c2_31 = arith.constant 2 : index
    %c1_32 = arith.constant 1 : index
    %c0_33 = arith.constant 0 : index
    %55 = vector.load %arg6[%c2_31, %c1_32, %c0_33] : memref<18x18x128xf32, #tpu.memory_space<vmem>>, vector<16x16x128xf32>
    %56 = vector.extract_strided_slice %6 {offsets = [2, 1, 0], sizes = [1, 1, 128], strides = [1, 1, 1]} : vector<3x3x128xf32> to vector<1x1x128xf32>
    %57 = vector.shape_cast %56 : vector<1x1x128xf32> to vector<128xf32>
    %58 = vector.shape_cast %57 : vector<128xf32> to vector<1x1x128xf32>
    %59 = vector.broadcast %58 : vector<1x1x128xf32> to vector<16x16x128xf32>
    %60 = arith.mulf %55, %59 : vector<16x16x128xf32>
    %61 = arith.addf %54, %60 : vector<16x16x128xf32>
    %c2_34 = arith.constant 2 : index
    %c2_35 = arith.constant 2 : index
    %c0_36 = arith.constant 0 : index
    %62 = vector.load %arg6[%c2_34, %c2_35, %c0_36] : memref<18x18x128xf32, #tpu.memory_space<vmem>>, vector<16x16x128xf32>
    %63 = vector.extract_strided_slice %6 {offsets = [2, 2, 0], sizes = [1, 1, 128], strides = [1, 1, 1]} : vector<3x3x128xf32> to vector<1x1x128xf32>
    %64 = vector.shape_cast %63 : vector<1x1x128xf32> to vector<128xf32>
    %65 = vector.shape_cast %64 : vector<128xf32> to vector<1x1x128xf32>
    %66 = vector.broadcast %65 : vector<1x1x128xf32> to vector<16x16x128xf32>
    %67 = arith.mulf %62, %66 : vector<16x16x128xf32>
    %68 = arith.addf %61, %67 : vector<16x16x128xf32>
    %c0_37 = arith.constant 0 : index
    %c0_38 = arith.constant 0 : index
    %69 = vector.load %arg4[%c0_37, %c0_38] : memref<1x128xf32, #tpu.memory_space<vmem>>, vector<1x128xf32>
    %70 = vector.shape_cast %69 : vector<1x128xf32> to vector<128xf32>
    %71 = vector.shape_cast %70 : vector<128xf32> to vector<1x1x128xf32>
    %72 = vector.broadcast %71 : vector<1x1x128xf32> to vector<16x16x128xf32>
    %73 = arith.addf %68, %72 : vector<16x16x128xf32>
    %cst_39 = arith.constant 0.000000e+00 : f32
    %cst_40 = arith.constant 6.000000e+00 : f32
    %74 = vector.broadcast %cst_39 : f32 to vector<16x16x128xf32>
    %75 = arith.maximumf %74, %73 : vector<16x16x128xf32>
    %76 = vector.broadcast %cst_40 : f32 to vector<16x16x128xf32>
    %77 = arith.minimumf %76, %75 : vector<16x16x128xf32>
    %78 = arith.truncf %77 : vector<16x16x128xf32> to vector<16x16x128xbf16>
    %c0_41 = arith.constant 0 : index
    %c0_42 = arith.constant 0 : index
    %c0_43 = arith.constant 0 : index
    %c0_44 = arith.constant 0 : index
    %79 = vector.load %arg5[%c0_41, %c0_42, %c0_43, %c0_44] : memref<1x16x16x128xbf16, #tpu.memory_space<vmem>>, vector<1x16x16x128xbf16>
    %80 = vector.shape_cast %79 : vector<1x16x16x128xbf16> to vector<16x16x128xbf16>
    %81 = vector.shape_cast %78 : vector<16x16x128xbf16> to vector<1x16x16x128xbf16>
    tpu.vector_store %arg5[%c0_41, %c0_42, %c0_43, %c0_44], %81 {strides = array<i32>} : memref<1x16x16x128xbf16, #tpu.memory_space<vmem>>, vector<1x16x16x128xbf16>,
    return
  }
  func.func @transform_0(%arg0: i32, %arg1: i32) -> (i32, i32, i32, i32) {
    %c0_i32 = arith.constant 0 : i32
    %c0_i32_0 = arith.constant 0 : i32
    %c0_i32_1 = arith.constant 0 : i32
    return %arg0, %c0_i32, %c0_i32_0, %arg1 : i32, i32, i32, i32
  }
  func.func @transform_1(%arg0: i32, %arg1: i32) -> (i32, i32, i32) {
    %c0_i32 = arith.constant 0 : i32
    %c0_i32_0 = arith.constant 0 : i32
    %c0_i32_1 = arith.constant 0 : i32
    return %c0_i32, %c0_i32_0, %arg1 : i32, i32, i32
  }
  func.func @transform_2(%arg0: i32, %arg1: i32) -> (i32, i32) {
    %c0_i32 = arith.constant 0 : i32
    %c0_i32_0 = arith.constant 0 : i32
    return %c0_i32, %arg1 : i32, i32
  }
  func.func @transform_3(%arg0: i32, %arg1: i32) -> (i32, i32, i32, i32) {
    %c0_i32 = arith.constant 0 : i32
    %c0_i32_0 = arith.constant 0 : i32
    %c0_i32_1 = arith.constant 0 : i32
    return %arg0, %c0_i32, %c0_i32_0, %arg1 : i32, i32, i32, i32
  }
}

</mosaic_0001>

<bundles_post_ra>
// kernel: inverted_residual_forward.3
= control target key start
LH: loop header
LB: loop body
LE: loop exit
PB: predicated region body
PF: predicated region fallthrough
CT: control target
= control target key end

     0   :  { %s798_s12 = smov 0   ;;  %s869_s0 = inlined_call_operand.vmem [shape: bf16[512,128], index: 0, kind: input, shape index: {}]   ;;  %s870_s1 = inlined_call_operand.vmem [shape: bf16[128,128], index: 1, kind: input, shape index: {}]   ;;  %s871_s2 = inlined_call_operand.vmem [shape: f32[1,128], index: 2, kind: input, shape index: {}]   ;;  %s872_s3 = inlined_call_operand.vmem [shape: bf16[512,128], index: 3, kind: output, shape index: {}]  }
   0x1 LB: > { %s575_s13 = sadd.s32 4294967295, %s776_s12   ;;  %p579_p0 = scmp.ge.s32.totalorder %s776_s12, 1  ;;  %s776_s12 = sphi %s798_s12, %s13_s12  }
   0x2   : > { %p138_p1 = scmp.lt.s32.totalorder %s776_s12, 5 }
   0x4   : > { %p139_p2 = pnand %p579_p0, %p138_p1 }
   0x5   : > { %v754_v0 = vld [vmem:[%s870_s1] sm:$0xff] (!%p139_p2)   ;;  %s580_s16 = sshll.u32 (!%p139_p2), %s575_s13, 4  ;;  %v755_v1 = vld [vmem:[%s870_s1 + $0x8] sm:$0xff] (!%p139_p2)   ;;  %v756_v2 = vld [vmem:[%s870_s1 + $0x10] sm:$0xff] (!%p139_p2)  }
   0x6   : > { %142 = sbr.rel (%p139_p2) target bundleno = 270 (0x10e), region = 32  ;;  %p163_p3 = scmp.lt.s32.totalorder (!%p139_p2), %s580_s16, 63  ;;  %698 = vmatprep.subr.bf16.mxu0 (!%p139_p2), %v754_v0  ;;  %730 = vmatprep.subr.bf16.mxu1 (!%p139_p2), %v754_v0  ;;  %v757_v3 = vld [vmem:[%s870_s1 + $0x18] sm:$0xff] (!%p139_p2)   ;;  %v758_v6 = vld [vmem:[%s870_s1 + $0x20] sm:$0xff] (!%p139_p2)   ;;  %v759_v7 = vld [vmem:[%s870_s1 + $0x28] sm:$0xff] (!%p139_p2)  }
   0x7   : > { %699 = vmatpush3.bf16.msra.mxu0 (!%p139_p2), %v754_v0  ;;  %738 = vmatpush3.bf16.msra.mxu1 (!%p139_p2), %v754_v0  ;;  %v760_v8 = vld [vmem:[%s870_s1 + $0x30] sm:$0xff] (!%p139_p2)   ;;  %v761_v9 = vld [vmem:[%s870_s1 + $0x38] sm:$0xff] (!%p139_p2)   ;;  %v584_v16 = vld [vmem:[%s871_s2] ss:$0 sm:$0xff] (!%p139_p2) }
   0x8   : > { %700 = vmatprep.subr.bf16.mxu0 (!%p139_p2), %v755_v1  ;;  %731 = vmatprep.subr.bf16.mxu1 (!%p139_p2), %v755_v1 }
   0xb   : > { %701 = vmatpush3.bf16.msra.mxu0 (!%p139_p2), %v755_v1  ;;  %739 = vmatpush3.bf16.msra.mxu1 (!%p139_p2), %v755_v1 }
   0xc   : > { %702 = vmatprep.subr.bf16.mxu0 (!%p139_p2), %v756_v2  ;;  %732 = vmatprep.subr.bf16.mxu1 (!%p139_p2), %v756_v2 }
   0xd   : > { %s874_s16 = smov (!%p163_p3, %s580_s16), 63 }
   0xe   : > { %s581_s21 = sshll.u32 %s874_s16, 2 }
   0xf   : > { %s823_s24 = scalar_lea.vmem %s869_s0, %s581_s21  ;;  %703 = vmatpush3.bf16.msra.mxu0 %v756_v2  ;;  %740 = vmatpush3.bf16.msra.mxu1 %v756_v2  ;;  %s856_s13 = scalar_lea.vmem %s872_s3, %s581_s21 }
  0x10   : > { %v762_v4 = vld [vmem:[%s823_s24] sm:$0xff]   ;;  %704 = vmatprep.subr.bf16.mxu0 %v757_v3  ;;  %733 = vmatprep.subr.bf16.mxu1 %v757_v3  ;;  %v764_v10 = vld [vmem:[%s823_s24 + $0x8] sm:$0xff]   ;;  %v766_v12 = vld [vmem:[%s823_s24 + $0x10] sm:$0xff]  }
  0x11   : > { %v763_v5 = vld [vmem:[%s823_s24 + $0x20] sm:$0xff]   ;;  %714 = vmatprep.mubr.bf16.mxu0 %v762_v4  ;;  %v765_v11 = vld [vmem:[%s823_s24 + $0x28] sm:$0xff]   ;;  %v767_v13 = vld [vmem:[%s823_s24 + $0x30] sm:$0xff]  }
  0x12   : > { %722 = vmatprep.mubr.bf16.mxu1 %v763_v5  ;;  %v768_v14 = vld [vmem:[%s823_s24 + $0x18] sm:$0xff]  }
  0x13   : > { %705 = vmatpush3.bf16.msra.mxu0 %v757_v3  ;;  %741 = vmatpush3.bf16.msra.mxu1 %v757_v3  ;;  %v769_v15 = vld [vmem:[%s823_s24 + $0x38] sm:$0xff]  }
  0x14   : > { %706 = vmatprep.subr.bf16.mxu0 %v758_v6  ;;  %734 = vmatprep.subr.bf16.mxu1 %v758_v6 }
  0x17   : > { %707 = vmatpush3.bf16.msra.mxu0 %v758_v6  ;;  %742 = vmatpush3.bf16.msra.mxu1 %v758_v6 }
  0x18   : > { %708 = vmatprep.subr.bf16.mxu0 %v759_v7  ;;  %735 = vmatprep.subr.bf16.mxu1 %v759_v7 }
  0x1b   : > { %709 = vmatpush3.bf16.msra.mxu0 %v759_v7  ;;  %743 = vmatpush3.bf16.msra.mxu1 %v759_v7 }
  0x1c   : > { %710 = vmatprep.subr.bf16.mxu0 %v760_v8  ;;  %736 = vmatprep.subr.bf16.mxu1 %v760_v8 }
  0x1f   : > { %711 = vmatpush3.bf16.msra.mxu0 %v760_v8  ;;  %744 = vmatpush3.bf16.msra.mxu1 %v760_v8 }
  0x20   : > { %712 = vmatprep.subr.bf16.mxu0 %v761_v9  ;;  %737 = vmatprep.subr.bf16.mxu1 %v761_v9 }
  0x23   : > { %713 = vmatpush3.bf16.msra.mxu0 %v761_v9  ;;  %745 = vmatpush3.bf16.msra.mxu1 %v761_v9 }
  0x26   : > { %715 = vmatmul.mubr.bf16.vlgmr.msra.gmra.mrb[0].mxu0 %v764_v10  ;;  %723 = vmatmul.mubr.bf16.vlgmr.msra.gmra.mrb[0].mxu1 %v765_v11 }
  0x27   : > { %718 = vmatprep.mubr.bf16.mxu0 %v766_v12  ;;  %726 = vmatprep.mubr.bf16.mxu1 %v767_v13 }
  0x2e   : > { %719 = vmatmul.mubr.bf16.gmra.mrb[4].mxu0 %v768_v14  ;;  %727 = vmatmul.mubr.bf16.gmra.mrb[4].mxu1 %v769_v15 }
  0xf9   : > { %v716_v17 = vpop.f32.mrb[0].mxu0  ;;  %v724_v18 = vpop.f32.mrb[0].mxu1 }
  0xfa   : > { %v353_v19 = vadd.f32 %v716_v17, %v584_v16  ;;  %v385_v20 = vadd.f32 %v724_v18, %v584_v16  ;;  %v344_v21 = vpop.f32.mrb[1].mxu0  ;;  %v376_v22 = vpop.f32.mrb[1].mxu1 }
  0xfb   : > { %v345_v23 = vadd.f32 %v584_v16, %v344_v21  ;;  %v377_v24 = vadd.f32 %v584_v16, %v376_v22  ;;  %v717_v25 = vpop.f32.mrb[2].mxu0  ;;  %v725_v26 = vpop.f32.mrb[2].mxu1 }
  0xfc   : > { %v409_v27 = vmax.f32 %v353_v19, 0.0  ;;  %v417_v28 = vmax.f32 %v385_v20, 0.0  ;;  %v356_v29 = vadd.f32 %v717_v25, %v584_v16  ;;  %v388_v30 = vadd.f32 %v725_v26, %v584_v16  ;;  %v347_v31 = vpop.f32.mrb[3].mxu0  ;;  %v379_v32 = vpop.f32.mrb[3].mxu1 }
  0xfd   : > { %v407_v33 = vmax.f32 %v345_v23, 0.0  ;;  %v415_v34 = vmax.f32 %v377_v24, 0.0  ;;  %v348_v35 = vadd.f32 %v584_v16, %v347_v31  ;;  %v380_v36 = vadd.f32 %v584_v16, %v379_v32 }
  0xfe   : > { %v410_v37 = vmax.f32 %v356_v29, 0.0  ;;  %v418_v38 = vmax.f32 %v388_v30, 0.0  ;;  %v425_v41 = vmin.f32 %v409_v27, 6.0  ;;  %v433_v42 = vmin.f32 %v417_v28, 6.0 }
  0xff   : > { %v408_v39 = vmax.f32 %v348_v35, 0.0  ;;  %v416_v40 = vmax.f32 %v380_v36, 0.0  ;;  %v423_v45 = vmin.f32 %v407_v33, 6.0  ;;  %v431_v46 = vmin.f32 %v415_v34, 6.0 }
 0x100   : > { %v426_v43 = vmin.f32 %v410_v37, 6.0  ;;  %v434_v44 = vmin.f32 %v418_v38, 6.0 }
 0x101   : > { %v424_v47 = vmin.f32 %v408_v39, 6.0  ;;  %v432_v48 = vmin.f32 %v416_v40, 6.0  ;;  %v720_v49 = vpop.f32.mrb[4].mxu0  ;;  %v728_v50 = vpop.f32.mrb[4].mxu1 }
 0x102   : > { %v643_v51 = vpack.c.bf16 %v426_v43, %v425_v41  ;;  %v663_v52 = vpack.c.bf16 %v434_v44, %v433_v42  ;;  %v369_v53 = vadd.f32 %v720_v49, %v584_v16  ;;  %v401_v54 = vadd.f32 %v728_v50, %v584_v16  ;;  %v360_v55 = vpop.f32.mrb[5].mxu0  ;;  %v392_v56 = vpop.f32.mrb[5].mxu1 }
 0x103   : > { %v638_v57 = vpack.c.bf16 %v424_v47, %v423_v45  ;;  %v658_v58 = vpack.c.bf16 %v432_v48, %v431_v46  ;;  %v361_v59 = vadd.f32 %v584_v16, %v360_v55  ;;  %v393_v60 = vadd.f32 %v584_v16, %v392_v56  ;;  %v721_v61 = vpop.f32.mrb[6].mxu0  ;;  %v729_v62 = vpop.f32.mrb[6].mxu1 }
 0x104   : > { %675 = vst [vmem:[%s856_s13 + $0x8] sm:$0xff] %v643_v51   ;;  %679 = vst [vmem:[%s856_s13 + $0x28] sm:$0xff] %v663_v52   ;;  %v413_v63 = vmax.f32 %v369_v53, 0.0  ;;  %v421_v0 = vmax.f32 %v401_v54, 0.0  ;;  %v372_v1 = vadd.f32 %v721_v61, %v584_v16  ;;  %v404_v2 = vadd.f32 %v729_v62, %v584_v16  ;;  %v363_v3 = vpop.f32.mrb[7].mxu0  ;;  %v395_v4 = vpop.f32.mrb[7].mxu1 }
 0x105   : > { %639 = vst [vmem:[%s856_s13] sm:$0xff] %v638_v57   ;;  %678 = vst [vmem:[%s856_s13 + $0x20] sm:$0xff] %v658_v58   ;;  %v411_v5 = vmax.f32 %v361_v59, 0.0  ;;  %v419_v6 = vmax.f32 %v393_v60, 0.0  ;;  %v364_v7 = vadd.f32 %v584_v16, %v363_v3  ;;  %v396_v8 = vadd.f32 %v584_v16, %v395_v4 }
 0x106   : > { %v414_v9 = vmax.f32 %v372_v1, 0.0  ;;  %v422_v10 = vmax.f32 %v404_v2, 0.0  ;;  %v429_v13 = vmin.f32 %v413_v63, 6.0  ;;  %v437_v14 = vmin.f32 %v421_v0, 6.0 }
 0x107   : > { %v412_v11 = vmax.f32 %v364_v7, 0.0  ;;  %v420_v12 = vmax.f32 %v396_v8, 0.0  ;;  %v427_v18 = vmin.f32 %v411_v5, 6.0  ;;  %v435_v19 = vmin.f32 %v419_v6, 6.0 }
 0x108   : > { %v430_v15 = vmin.f32 %v414_v9, 6.0  ;;  %v438_v17 = vmin.f32 %v422_v10, 6.0 }
 0x109   : > { %v428_v20 = vmin.f32 %v412_v11, 6.0  ;;  %v436_v21 = vmin.f32 %v420_v12, 6.0 }
 0x10a   : > { %v653_v22 = vpack.c.bf16 %v430_v15, %v429_v13  ;;  %v673_v23 = vpack.c.bf16 %v438_v17, %v437_v14 }
 0x10b   : > { %v648_v24 = vpack.c.bf16 %v428_v20, %v427_v18  ;;  %v668_v16 = vpack.c.bf16 %v436_v21, %v435_v19 }
 0x10c   : > { %677 = vst [vmem:[%s856_s13 + $0x18] sm:$0xff] %v653_v22   ;;  %681 = vst [vmem:[%s856_s13 + $0x38] sm:$0xff] %v673_v23  }
 0x10d   : > { %676 = vst [vmem:[%s856_s13 + $0x10] sm:$0xff] %v648_v24   ;;  %680 = vst [vmem:[%s856_s13 + $0x30] sm:$0xff] %v668_v16  }
 0x10e PF: > { %s13_s12 = sadd.s32 1, %s776_s12  }
 0x10f   : > { %p10_p4 = scmp.ge.s32.totalorder %s13_s12, 6  }
 0x111   :  { %12 = sbr.rel (!%p10_p4) target bundleno = 1 (0x1), region = 62 }

// kernel: inverted_residual_forward.5
= control target key start
LH: loop header
LB: loop body
LE: loop exit
PB: predicated region body
PF: predicated region fallthrough
CT: control target
= control target key end

     0   :  { %s778_s15 = smov 0   ;;  %s889_s0 = inlined_call_operand.vmem [shape: bf16[512,128], index: 0, kind: input, shape index: {}]   ;;  %s890_s1 = inlined_call_operand.vmem [shape: bf16[128,128], index: 1, kind: input, shape index: {}]   ;;  %s891_s2 = inlined_call_operand.vmem [shape: f32[1,128], index: 2, kind: input, shape index: {}]   ;;  %s892_s3 = inlined_call_operand.vmem [shape: bf16[512,128], index: 3, kind: input, shape index: {}]   ;;  %s893_s4 = inlined_call_operand.vmem [shape: f32[512,128], index: 4, kind: output, shape index: {}]  }
   0x1 LB: > { %s588_s16 = sadd.s32 4294967295, %s751_s15   ;;  %p592_p0 = scmp.ge.s32.totalorder %s751_s15, 1  ;;  %s751_s15 = sphi %s778_s15, %s14_s15  }
   0x2   : > { %p174_p1 = scmp.lt.s32.totalorder %s751_s15, 5 }
   0x4   : > { %p175_p2 = pnand %p592_p0, %p174_p1 }
   0x5   : > { %v729_v0 = vld [vmem:[%s890_s1] sm:$0xff] (!%p175_p2)   ;;  %s593_s19 = sshll.u32 (!%p175_p2), %s588_s16, 4  ;;  %v730_v1 = vld [vmem:[%s890_s1 + $0x8] sm:$0xff] (!%p175_p2)   ;;  %v731_v2 = vld [vmem:[%s890_s1 + $0x10] sm:$0xff] (!%p175_p2)  }
   0x6   : > { %178 = sbr.rel (%p175_p2) target bundleno = 266 (0x10a), region = 36  ;;  %p206_p3 = scmp.lt.s32.totalorder (!%p175_p2), %s593_s19, 63  ;;  %673 = vmatprep.subr.bf16.mxu0 (!%p175_p2), %v729_v0  ;;  %705 = vmatprep.subr.bf16.mxu1 (!%p175_p2), %v729_v0  ;;  %v732_v3 = vld [vmem:[%s890_s1 + $0x18] sm:$0xff] (!%p175_p2)   ;;  %v733_v6 = vld [vmem:[%s890_s1 + $0x20] sm:$0xff] (!%p175_p2)   ;;  %v734_v7 = vld [vmem:[%s890_s1 + $0x28] sm:$0xff] (!%p175_p2)  }
   0x7   : > { %674 = vmatpush3.bf16.msra.mxu0 (!%p175_p2), %v729_v0  ;;  %713 = vmatpush3.bf16.msra.mxu1 (!%p175_p2), %v729_v0  ;;  %v735_v8 = vld [vmem:[%s890_s1 + $0x30] sm:$0xff] (!%p175_p2)   ;;  %v736_v9 = vld [vmem:[%s890_s1 + $0x38] sm:$0xff] (!%p175_p2)   ;;  %v842_v20 = vld [vmem:[%s891_s2] ss:$0 sm:$0xff] (!%p175_p2) }
   0x8   : > { %675 = vmatprep.subr.bf16.mxu0 (!%p175_p2), %v730_v1  ;;  %706 = vmatprep.subr.bf16.mxu1 (!%p175_p2), %v730_v1 }
   0xb   : > { %676 = vmatpush3.bf16.msra.mxu0 (!%p175_p2), %v730_v1  ;;  %714 = vmatpush3.bf16.msra.mxu1 (!%p175_p2), %v730_v1 }
   0xc   : > { %677 = vmatprep.subr.bf16.mxu0 (!%p175_p2), %v731_v2  ;;  %707 = vmatprep.subr.bf16.mxu1 (!%p175_p2), %v731_v2 }
   0xd   : > { %s895_s19 = smov (!%p206_p3, %s593_s19), 63 }
   0xe   : > { %s594_s24 = sshll.u32 %s895_s19, 2  ;;  %s598_s18 = sshll.u32 %s895_s19, 3 }
   0xf   : > { %s803_s27 = scalar_lea.vmem %s889_s0, %s594_s24  ;;  %678 = vmatpush3.bf16.msra.mxu0 %v731_v2  ;;  %715 = vmatpush3.bf16.msra.mxu1 %v731_v2  ;;  %s833_s14 = scalar_lea.vmem %s892_s3, %s594_s24 }
  0x10   : > { %v737_v4 = vld [vmem:[%s803_s27] sm:$0xff]   ;;  %679 = vmatprep.subr.bf16.mxu0 %v732_v3  ;;  %708 = vmatprep.subr.bf16.mxu1 %v732_v3  ;;  %v739_v10 = vld [vmem:[%s803_s27 + $0x8] sm:$0xff]   ;;  %v741_v12 = vld [vmem:[%s803_s27 + $0x10] sm:$0xff]   ;;  %s850_s22 = scalar_lea.vmem %s893_s4, %s598_s18 }
  0x11   : > { %v738_v5 = vld [vmem:[%s803_s27 + $0x20] sm:$0xff]   ;;  %689 = vmatprep.mubr.bf16.mxu0 %v737_v4  ;;  %v740_v11 = vld [vmem:[%s803_s27 + $0x28] sm:$0xff]   ;;  %v742_v13 = vld [vmem:[%s803_s27 + $0x30] sm:$0xff]  }
  0x12   : > { %697 = vmatprep.mubr.bf16.mxu1 %v738_v5  ;;  %v743_v14 = vld [vmem:[%s803_s27 + $0x18] sm:$0xff]   ;;  %v650_v16 = vld [vmem:[%s833_s14 + $0x8] sm:$0xff]   ;;  %v619_v18 = vld [vmem:[%s833_s14] sm:$0xff]  }
  0x13   : > { %680 = vmatpush3.bf16.msra.mxu0 %v732_v3  ;;  %716 = vmatpush3.bf16.msra.mxu1 %v732_v3  ;;  %v744_v15 = vld [vmem:[%s803_s27 + $0x38] sm:$0xff]   ;;  %v654_v17 = vld [vmem:[%s833_s14 + $0x28] sm:$0xff]   ;;  %v653_v19 = vld [vmem:[%s833_s14 + $0x20] sm:$0xff]   ;;  %v624_v21 = vunpack.c.l.bf16 %v650_v16  ;;  %v620_v25 = vunpack.c.l.bf16 %v619_v18  ;;  %v625_v31 = vunpack.c.h.bf16 %v650_v16  ;;  %v621_v37 = vunpack.c.h.bf16 %v619_v18 }
  0x14   : > { %681 = vmatprep.subr.bf16.mxu0 %v733_v6  ;;  %709 = vmatprep.subr.bf16.mxu1 %v733_v6  ;;  %v640_v22 = vunpack.c.l.bf16 %v654_v17  ;;  %v636_v26 = vunpack.c.l.bf16 %v653_v19  ;;  %v641_v32 = vunpack.c.h.bf16 %v654_v17  ;;  %v637_v38 = vunpack.c.h.bf16 %v653_v19  ;;  %v652_v49 = vld [vmem:[%s833_s14 + $0x18] sm:$0xff]   ;;  %v651_v53 = vld [vmem:[%s833_s14 + $0x10] sm:$0xff]  }
  0x15   : > { %v656_v50 = vld [vmem:[%s833_s14 + $0x38] sm:$0xff]   ;;  %v655_v54 = vld [vmem:[%s833_s14 + $0x30] sm:$0xff]   ;;  %v632_v57 = vunpack.c.l.bf16 %v652_v49  ;;  %v628_v61 = vunpack.c.l.bf16 %v651_v53  ;;  %v633_v3 = vunpack.c.h.bf16 %v652_v49 }
  0x16   : > { %v648_v58 = vunpack.c.l.bf16 %v656_v50  ;;  %v644_v62 = vunpack.c.l.bf16 %v655_v54  ;;  %v649_v4 = vunpack.c.h.bf16 %v656_v50 }
  0x17   : > { %682 = vmatpush3.bf16.msra.mxu0 %v733_v6  ;;  %717 = vmatpush3.bf16.msra.mxu1 %v733_v6 }
  0x18   : > { %683 = vmatprep.subr.bf16.mxu0 %v734_v7  ;;  %710 = vmatprep.subr.bf16.mxu1 %v734_v7 }
  0x1b   : > { %684 = vmatpush3.bf16.msra.mxu0 %v734_v7  ;;  %718 = vmatpush3.bf16.msra.mxu1 %v734_v7 }
  0x1c   : > { %685 = vmatprep.subr.bf16.mxu0 %v735_v8  ;;  %711 = vmatprep.subr.bf16.mxu1 %v735_v8 }
  0x1f   : > { %686 = vmatpush3.bf16.msra.mxu0 %v735_v8  ;;  %719 = vmatpush3.bf16.msra.mxu1 %v735_v8 }
  0x20   : > { %687 = vmatprep.subr.bf16.mxu0 %v736_v9  ;;  %712 = vmatprep.subr.bf16.mxu1 %v736_v9 }
  0x23   : > { %688 = vmatpush3.bf16.msra.mxu0 %v736_v9  ;;  %720 = vmatpush3.bf16.msra.mxu1 %v736_v9  ;;  %v629_v9 = vunpack.c.h.bf16 %v651_v53 }
  0x26   : > { %690 = vmatmul.mubr.bf16.vlgmr.msra.gmra.mrb[0].mxu0 %v739_v10  ;;  %698 = vmatmul.mubr.bf16.vlgmr.msra.gmra.mrb[0].mxu1 %v740_v11  ;;  %v645_v10 = vunpack.c.h.bf16 %v655_v54 }
  0x27   : > { %693 = vmatprep.mubr.bf16.mxu0 %v741_v12  ;;  %701 = vmatprep.mubr.bf16.mxu1 %v742_v13 }
  0x2e   : > { %694 = vmatmul.mubr.bf16.gmra.mrb[4].mxu0 %v743_v14  ;;  %702 = vmatmul.mubr.bf16.gmra.mrb[4].mxu1 %v744_v15 }
  0xf9   : > { %v691_v23 = vpop.f32.mrb[0].mxu0  ;;  %v699_v24 = vpop.f32.mrb[0].mxu1 }
  0xfa   : > { %v402_v27 = vadd.f32 %v691_v23, %v842_v20  ;;  %v434_v28 = vadd.f32 %v699_v24, %v842_v20  ;;  %v393_v29 = vpop.f32.mrb[1].mxu0  ;;  %v425_v30 = vpop.f32.mrb[1].mxu1 }
  0xfb   : > { %v394_v33 = vadd.f32 %v842_v20, %v393_v29  ;;  %v426_v34 = vadd.f32 %v842_v20, %v425_v30  ;;  %v692_v35 = vpop.f32.mrb[2].mxu0  ;;  %v700_v36 = vpop.f32.mrb[2].mxu1 }
  0xfc   : > { %v490_v39 = vadd.f32 %v624_v21, %v402_v27  ;;  %v498_v40 = vadd.f32 %v640_v22, %v434_v28  ;;  %v405_v41 = vadd.f32 %v692_v35, %v842_v20  ;;  %v437_v42 = vadd.f32 %v700_v36, %v842_v20  ;;  %v396_v43 = vpop.f32.mrb[3].mxu0  ;;  %v428_v44 = vpop.f32.mrb[3].mxu1 }
  0xfd   : > { %v488_v45 = vadd.f32 %v620_v25, %v394_v33  ;;  %v496_v46 = vadd.f32 %v636_v26, %v426_v34  ;;  %v397_v47 = vadd.f32 %v842_v20, %v396_v43  ;;  %v429_v48 = vadd.f32 %v842_v20, %v428_v44 }
  0xfe   : > { %506 = vst [vmem:[%s850_s22 + $0x10] sm:$0xff] %v490_v39  ;;  %514 = vst [vmem:[%s850_s22 + $0x50] sm:$0xff] %v498_v40  ;;  %v491_v51 = vadd.f32 %v625_v31, %v405_v41  ;;  %v499_v52 = vadd.f32 %v641_v32, %v437_v42 }
  0xff   : > { %504 = vst [vmem:[%s850_s22] sm:$0xff] %v488_v45  ;;  %512 = vst [vmem:[%s850_s22 + $0x40] sm:$0xff] %v496_v46  ;;  %v489_v55 = vadd.f32 %v621_v37, %v397_v47  ;;  %v497_v56 = vadd.f32 %v637_v38, %v429_v48 }
 0x100   : > { %507 = vst [vmem:[%s850_s22 + $0x18] sm:$0xff] %v491_v51  ;;  %515 = vst [vmem:[%s850_s22 + $0x58] sm:$0xff] %v499_v52 }
 0x101   : > { %505 = vst [vmem:[%s850_s22 + $0x8] sm:$0xff] %v489_v55  ;;  %513 = vst [vmem:[%s850_s22 + $0x48] sm:$0xff] %v497_v56  ;;  %v695_v59 = vpop.f32.mrb[4].mxu0  ;;  %v703_v60 = vpop.f32.mrb[4].mxu1 }
 0x102   : > { %v418_v63 = vadd.f32 %v695_v59, %v842_v20  ;;  %v450_v0 = vadd.f32 %v703_v60, %v842_v20  ;;  %v409_v1 = vpop.f32.mrb[5].mxu0  ;;  %v441_v2 = vpop.f32.mrb[5].mxu1 }
 0x103   : > { %v410_v5 = vadd.f32 %v842_v20, %v409_v1  ;;  %v442_v6 = vadd.f32 %v842_v20, %v441_v2  ;;  %v696_v7 = vpop.f32.mrb[6].mxu0  ;;  %v704_v8 = vpop.f32.mrb[6].mxu1 }
 0x104   : > { %v494_v11 = vadd.f32 %v632_v57, %v418_v63  ;;  %v502_v12 = vadd.f32 %v648_v58, %v450_v0  ;;  %v421_v13 = vadd.f32 %v696_v7, %v842_v20  ;;  %v453_v14 = vadd.f32 %v704_v8, %v842_v20  ;;  %v412_v15 = vpop.f32.mrb[7].mxu0  ;;  %v444_v16 = vpop.f32.mrb[7].mxu1 }
 0x105   : > { %v492_v17 = vadd.f32 %v628_v61, %v410_v5  ;;  %v500_v18 = vadd.f32 %v644_v62, %v442_v6  ;;  %v413_v19 = vadd.f32 %v842_v20, %v412_v15  ;;  %v445_v21 = vadd.f32 %v842_v20, %v444_v16 }
 0x106   : > { %510 = vst [vmem:[%s850_s22 + $0x30] sm:$0xff] %v494_v11  ;;  %518 = vst [vmem:[%s850_s22 + $0x70] sm:$0xff] %v502_v12  ;;  %v495_v22 = vadd.f32 %v633_v3, %v421_v13  ;;  %v503_v23 = vadd.f32 %v649_v4, %v453_v14 }
 0x107   : > { %508 = vst [vmem:[%s850_s22 + $0x20] sm:$0xff] %v492_v17  ;;  %516 = vst [vmem:[%s850_s22 + $0x60] sm:$0xff] %v500_v18  ;;  %v493_v24 = vadd.f32 %v629_v9, %v413_v19  ;;  %v501_v25 = vadd.f32 %v645_v10, %v445_v21 }
 0x108   : > { %511 = vst [vmem:[%s850_s22 + $0x38] sm:$0xff] %v495_v22  ;;  %519 = vst [vmem:[%s850_s22 + $0x78] sm:$0xff] %v503_v23 }
 0x109   : > { %509 = vst [vmem:[%s850_s22 + $0x28] sm:$0xff] %v493_v24  ;;  %517 = vst [vmem:[%s850_s22 + $0x68] sm:$0xff] %v501_v25 }
 0x10a PF: > { %s14_s15 = sadd.s32 1, %s751_s15  }
 0x10b   : > { %p11_p4 = scmp.ge.s32.totalorder %s14_s15, 6  }
 0x10d   :  { %13 = sbr.rel (!%p11_p4) target bundleno = 1 (0x1), region = 69 }

// kernel: inverted_residual_forward.4
= control target key start
LH: loop header
LB: loop body
LE: loop exit
PB: predicated region body
PF: predicated region fallthrough
CT: control target
= control target key end

     0   :  { %s1956_s12 = smov 0   ;;  %s1958_s13 = smov 0   ;;  %s2805_s0 = inlined_call_operand.vmem [shape: bf16[2,16,16,128], index: 0, kind: input, shape index: {}]   ;;  %s2806_s1 = inlined_call_operand.vmem [shape: f32[3,3,128], index: 1, kind: input, shape index: {}]   ;;  %s2807_s2 = inlined_call_operand.vmem [shape: f32[1,128], index: 2, kind: input, shape index: {}]   ;;  %s2808_s3 = inlined_call_operand.vmem [shape: bf16[2,16,16,128], index: 3, kind: output, shape index: {}]  }
   0x1   :  { %s1960_s14 = smov 0  }
   0x2 LB: > { %s25_s15 = sadd.s32 1, %s1929_s13  ;;  %p1636_p0 = scmp.ge.s32.totalorder %s1933_s14, 1  ;;  %s1933_s14 = sphi %s1960_s14, %s13_s14   ;;  %s1929_s13 = sphi %s1958_s13, %s2810_s13   ;;  %s1925_s12 = sphi %s1956_s12, %s2809_s12  }
   0x3   : > { %p27_p1 = scmp.ge.s32.totalorder %s25_s15, 2  ;;  %p173_p2 = scmp.lt.s32.totalorder %s1933_s14, 3 }
   0x5   : > { %s2812_s15 = smov (%p27_p1, %s25_s15), 0  ;;  %p174_p3 = pnand %p1636_p0, %p173_p2 }
   0x6   : > { %p210_p4 = scmp.lt.s32.totalorder (!%p174_p3), %s1925_s12, 1  ;;  %v419_v0 = vlaneseq (!%p174_p3)  ;;  %v1935_v1 = vmov (!%p174_p3), 0.0   ;;  %v384_v3 = vld [vmem:[%s2806_s1] sm:$0x7] (!%p174_p3)  ;;  %v1988_v4 = vld [vmem:[%s2806_s1 + $0x4] sm:$0x7] (!%p174_p3) }
   0x7   : > { %177 = sbr.rel (%p174_p3) target bundleno = 218 (0xda), region = 32  ;;  %233 = vst [vmem:[#allocation2] sm:$0xff] (!%p174_p3), %v1935_v1  ;;  %234 = vst [vmem:[#allocation2 + $0x8] sm:$0xff] (!%p174_p3), %v1935_v1  ;;  %v386_v59 = vld [vmem:[%s2806_s1 + $0x8] sm:$0x7] (!%p174_p3) }
   0x8   : > { %235 = vst [vmem:[#allocation2 + $0x10] sm:$0x3] (!%p174_p3), %v1935_v1  ;;  %236 = vst [vmem:[#allocation2 + $0x18] sm:$0xff] (!%p174_p3), %v1935_v1  ;;  %v420_v2 = vshrl.u32 (!%p174_p3), %v419_v0, 7 }
   0x9   : > { %237 = vst [vmem:[#allocation2 + $0x20] sm:$0xff] (!%p174_p3), %v1935_v1  ;;  %238 = vst [vmem:[#allocation2 + $0x28] sm:$0x3] (!%p174_p3), %v1935_v1 }
   0xa   : > { %239 = vst [vmem:[#allocation2 + $0x30] sm:$0xff] (!%p174_p3), %v1935_v1  ;;  %240 = vst [vmem:[#allocation2 + $0x38] sm:$0xff] (!%p174_p3), %v1935_v1  ;;  %v1991_v5 = vsub.s32 (!%p174_p3), 0, %v420_v2  ;;  %v1993_v6 = vsub.s32 (!%p174_p3), 1, %v420_v2  ;;  %v1995_v7 = vsub.s32 (!%p174_p3), 2, %v420_v2 }
   0xb   : > { %241 = vst [vmem:[#allocation2 + $0x40] sm:$0x3] (!%p174_p3), %v1935_v1  ;;  %242 = vst [vmem:[#allocation2 + $0x48] sm:$0xff] (!%p174_p3), %v1935_v1 }
   0xc   : > { %243 = vst [vmem:[#allocation2 + $0x50] sm:$0xff] (!%p174_p3), %v1935_v1  ;;  %244 = vst [vmem:[#allocation2 + $0x58] sm:$0x3] (!%p174_p3), %v1935_v1  ;;  %v2008_v11 = vrot.slane (!%p174_p3), %v384_v3, %v1991_v5  ;;  %v2011_v12 = vrot.slane (!%p174_p3), %v384_v3, %v1993_v6  ;;  %v2014_v13 = vrot.slane (!%p174_p3), %v384_v3, %v1995_v7 }
   0xd   : > { %245 = vst [vmem:[#allocation2 + $0x60] sm:$0xff] (!%p174_p3), %v1935_v1  ;;  %246 = vst [vmem:[#allocation2 + $0x68] sm:$0xff] (!%p174_p3), %v1935_v1  ;;  %v2018_v14 = vrot.slane (!%p174_p3), %v1988_v4, %v1991_v5 }
   0xe   : > { %247 = vst [vmem:[#allocation2 + $0x70] sm:$0x3] %v1935_v1  ;;  %248 = vst [vmem:[#allocation2 + $0x78] sm:$0xff] %v1935_v1  ;;  %s2814_s12 = smov (!%p210_p4, %s1925_s12), 1  ;;  %v455_v52 = vld [vmem:[#allocation2 + $0x1] sm:$0xff] }
   0xf   : > { %249 = vst [vmem:[#allocation2 + $0x80] sm:$0xff] %v1935_v1  ;;  %250 = vst [vmem:[#allocation2 + $0x88] sm:$0x3] %v1935_v1  ;;  %s1676_s20 = sshll.u32 %s2814_s12, 7  ;;  %v456_v53 = vld [vmem:[#allocation2 + $0x9] sm:$0xff]  ;;  %v491_v2 = vmul.f32 %v2011_v12, %v455_v52  ;;  %v2114_v52 = vrot.slane %v386_v59, %v1995_v7 }
  0x10   : > { %251 = vst [vmem:[#allocation2 + $0x90] sm:$0xff] %v1935_v1  ;;  %252 = vst [vmem:[#allocation2 + $0x98] sm:$0xff] %v1935_v1  ;;  %s2002_s23 = scalar_lea.vmem %s2805_s0, %s1676_s20  ;;  %v555_v54 = vld [vmem:[#allocation2 + $0x2] sm:$0xff]  ;;  %v556_v60 = vld [vmem:[#allocation2 + $0xa] sm:$0xff]  ;;  %v492_v3 = vmul.f32 %v2011_v12, %v456_v53  ;;  %s2190_s30 = scalar_lea.vmem %s2808_s3, %s1676_s20 }
  0x11   : > { %253 = vst [vmem:[#allocation2 + $0xa0] sm:$0x3] %v1935_v1  ;;  %254 = vst [vmem:[#allocation2 + $0xa8] sm:$0xff] %v1935_v1  ;;  %v1711_v8 = vld [vmem:[%s2002_s23] sm:$0xff]   ;;  %v1854_v9 = vld [vmem:[%s2002_s23 + $0x8] sm:$0xff]  }
  0x12   : > { %255 = vst [vmem:[#allocation2 + $0xb0] sm:$0xff] %v1935_v1  ;;  %256 = vst [vmem:[#allocation2 + $0xb8] sm:$0x3] %v1935_v1  ;;  %v1855_v10 = vld [vmem:[%s2002_s23 + $0x10] sm:$0xff]   ;;  %v2020_v15 = vunpack.c.l.bf16 %v1711_v8  ;;  %v2022_v16 = vunpack.c.h.bf16 %v1711_v8  ;;  %v2024_v17 = vunpack.c.l.bf16 %v1854_v9  ;;  %v2026_v18 = vunpack.c.h.bf16 %v1854_v9  ;;  %v1856_v19 = vld [vmem:[%s2002_s23 + $0x18] sm:$0xff]  }
  0x13   : > { %257 = vst [vmem:[#allocation2 + $0xc0] sm:$0xff] %v1935_v1  ;;  %258 = vst [vmem:[#allocation2 + $0xc8] sm:$0xff] %v1935_v1  ;;  %v1857_v20 = vld [vmem:[%s2002_s23 + $0x20] sm:$0xff]   ;;  %v1858_v21 = vld [vmem:[%s2002_s23 + $0x28] sm:$0xff]   ;;  %v2031_v22 = vunpack.c.l.bf16 %v1855_v10  ;;  %v2033_v23 = vunpack.c.h.bf16 %v1855_v10  ;;  %v2035_v24 = vunpack.c.l.bf16 %v1856_v19  ;;  %v2037_v25 = vunpack.c.h.bf16 %v1856_v19 }
  0x14   : > { %259 = vst [vmem:[#allocation2 + $0xd0] sm:$0x3] %v1935_v1  ;;  %260 = vst [vmem:[#allocation2 + $0xd8] sm:$0xff] %v1935_v1  ;;  %v1859_v26 = vld [vmem:[%s2002_s23 + $0x30] sm:$0xff]   ;;  %v1860_v27 = vld [vmem:[%s2002_s23 + $0x38] sm:$0xff]   ;;  %v2046_v29 = vunpack.c.l.bf16 %v1857_v20  ;;  %v2048_v30 = vunpack.c.h.bf16 %v1857_v20  ;;  %v2050_v31 = vunpack.c.l.bf16 %v1858_v21  ;;  %v2052_v32 = vunpack.c.h.bf16 %v1858_v21 }
  0x15   : > { %261 = vst [vmem:[#allocation2 + $0xe0] sm:$0xff] %v1935_v1  ;;  %262 = vst [vmem:[#allocation2 + $0xe8] sm:$0x3] %v1935_v1  ;;  %v1861_v28 = vld [vmem:[%s2002_s23 + $0x40] sm:$0xff]   ;;  %v1862_v33 = vld [vmem:[%s2002_s23 + $0x48] sm:$0xff]   ;;  %v2061_v36 = vunpack.c.l.bf16 %v1859_v26  ;;  %v2063_v37 = vunpack.c.h.bf16 %v1859_v26  ;;  %v2065_v38 = vunpack.c.l.bf16 %v1860_v27  ;;  %v2067_v39 = vunpack.c.h.bf16 %v1860_v27 }
  0x16   : > { %263 = vst [vmem:[#allocation2 + $0xf0] sm:$0xff] %v1935_v1  ;;  %264 = vst [vmem:[#allocation2 + $0xf8] sm:$0xff] %v1935_v1  ;;  %v1863_v34 = vld [vmem:[%s2002_s23 + $0x50] sm:$0xff]   ;;  %v1864_v35 = vld [vmem:[%s2002_s23 + $0x58] sm:$0xff]   ;;  %v1744_v42 = vunpack.c.l.bf16 %v1861_v28  ;;  %v1745_v43 = vunpack.c.h.bf16 %v1861_v28  ;;  %v1748_v44 = vunpack.c.l.bf16 %v1862_v33  ;;  %v1749_v45 = vunpack.c.h.bf16 %v1862_v33 }
  0x17   : > { %265 = vst [vmem:[#allocation2 + $0x100] sm:$0x3] %v1935_v1  ;;  %266 = vst [vmem:[#allocation2 + $0x108] sm:$0xff] %v1935_v1  ;;  %v1865_v40 = vld [vmem:[%s2002_s23 + $0x60] sm:$0xff]   ;;  %v1866_v41 = vld [vmem:[%s2002_s23 + $0x68] sm:$0xff]   ;;  %v1752_v48 = vunpack.c.l.bf16 %v1863_v34  ;;  %v1753_v49 = vunpack.c.h.bf16 %v1863_v34  ;;  %v1756_v50 = vunpack.c.l.bf16 %v1864_v35  ;;  %v1757_v51 = vunpack.c.h.bf16 %v1864_v35 }
  0x18   : > { %267 = vst [vmem:[#allocation2 + $0x110] sm:$0xff] %v1935_v1  ;;  %268 = vst [vmem:[#allocation2 + $0x118] sm:$0x3] %v1935_v1  ;;  %v1867_v46 = vld [vmem:[%s2002_s23 + $0x70] sm:$0xff]   ;;  %v1868_v47 = vld [vmem:[%s2002_s23 + $0x78] sm:$0xff]   ;;  %v1760_v55 = vunpack.c.l.bf16 %v1865_v40  ;;  %v1761_v56 = vunpack.c.h.bf16 %v1865_v40  ;;  %v1764_v57 = vunpack.c.l.bf16 %v1866_v41  ;;  %v1765_v58 = vunpack.c.h.bf16 %v1866_v41 }
  0x19   : > { %269 = vst [vmem:[#allocation2 + $0x120] sm:$0xff] %v1935_v1  ;;  %270 = vst [vmem:[#allocation2 + $0x128] sm:$0xff] %v1935_v1  ;;  %v1768_v61 = vunpack.c.l.bf16 %v1867_v46  ;;  %v1769_v62 = vunpack.c.h.bf16 %v1867_v46  ;;  %v1772_v63 = vunpack.c.l.bf16 %v1868_v47  ;;  %v1773_v0 = vunpack.c.h.bf16 %v1868_v47 }
  0x1a   : > { %271 = vst [vmem:[#allocation2 + $0x130] sm:$0x3] %v1935_v1  ;;  %272 = vst [vmem:[#allocation2 + $0x138] sm:$0xff] %v1935_v1  ;;  %v591_v8 = vmul.f32 %v2014_v13, %v555_v54  ;;  %v592_v9 = vmul.f32 %v2014_v13, %v556_v60  ;;  %v2091_v20 = vrot.slane %v1988_v4, %v1993_v6 }
  0x1b   : > { %273 = vst [vmem:[#allocation2 + $0x140] sm:$0xff] %v1935_v1  ;;  %274 = vst [vmem:[#allocation2 + $0x148] sm:$0x3] %v1935_v1  ;;  %v2095_v26 = vrot.slane %v1988_v4, %v1995_v7  ;;  %v2098_v27 = vrot.slane %v386_v59, %v1991_v5 }
  0x1c   : > { %275 = vst [vmem:[#allocation2 + $0x150] sm:$0xff] %v1935_v1  ;;  %276 = vst [vmem:[#allocation2 + $0x158] sm:$0xff] %v1935_v1 }
  0x1d   : > { %277 = vst [vmem:[#allocation2 + $0x160] sm:$0x3] %v1935_v1  ;;  %278 = vst [vmem:[#allocation2 + $0x168] sm:$0xff] %v1935_v1 }
  0x1e   : > { %279 = vst [vmem:[#allocation2 + $0x170] sm:$0xff] %v1935_v1  ;;  %280 = vst [vmem:[#allocation2 + $0x178] sm:$0x3] %v1935_v1 }
  0x1f   : > { %281 = vst [vmem:[#allocation2 + $0x180] sm:$0xff] %v1935_v1  ;;  %282 = vst [vmem:[#allocation2 + $0x188] sm:$0xff] %v1935_v1 }
  0x20   : > { %283 = vst [vmem:[#allocation2 + $0x190] sm:$0x3] %v1935_v1  ;;  %284 = vst [vmem:[#allocation2 + $0x198] sm:$0xff] %v1935_v1 }
  0x21   : > { %285 = vst [vmem:[#allocation2 + $0x1a0] sm:$0xff] %v1935_v1  ;;  %286 = vst [vmem:[#allocation2 + $0x1a8] sm:$0x3] %v1935_v1  ;;  %v423_v1 = vmul.f32 0.0, %v2008_v11 }
  0x22   : > { %352 = vst [vmem:[#allocation2 + $0x19] sm:$0xff] %v2020_v15  ;;  %353 = vst [vmem:[#allocation2 + $0x21] sm:$0xff] %v2022_v16 }
  0x23   : > { %354 = vst [vmem:[#allocation2 + $0x31] sm:$0xff] %v2024_v17  ;;  %355 = vst [vmem:[#allocation2 + $0x39] sm:$0xff] %v2026_v18  ;;  %v523_v28 = vadd.f32 %v491_v2, %v423_v1  ;;  %v524_v33 = vadd.f32 %v492_v3, %v423_v1 }
  0x24   : > { %356 = vst [vmem:[#allocation2 + $0x49] sm:$0xff] %v2031_v22  ;;  %357 = vst [vmem:[#allocation2 + $0x51] sm:$0xff] %v2033_v23 }
  0x25   : > { %358 = vst [vmem:[#allocation2 + $0x61] sm:$0xff] %v2035_v24  ;;  %359 = vst [vmem:[#allocation2 + $0x69] sm:$0xff] %v2037_v25  ;;  %v624_v46 = vadd.f32 %v592_v9, %v524_v33 }
  0x26   : > { %360 = vst [vmem:[#allocation2 + $0x79] sm:$0xff] %v2046_v29  ;;  %361 = vst [vmem:[#allocation2 + $0x81] sm:$0xff] %v2048_v30 }
  0x27   : > { %362 = vst [vmem:[#allocation2 + $0x91] sm:$0xff] %v2050_v31  ;;  %363 = vst [vmem:[#allocation2 + $0x99] sm:$0xff] %v2052_v32 }
  0x28   : > { %364 = vst [vmem:[#allocation2 + $0xa9] sm:$0xff] %v2061_v36  ;;  %365 = vst [vmem:[#allocation2 + $0xb1] sm:$0xff] %v2063_v37 }
  0x29   : > { %366 = vst [vmem:[#allocation2 + $0xc1] sm:$0xff] %v2065_v38  ;;  %367 = vst [vmem:[#allocation2 + $0xc9] sm:$0xff] %v2067_v39  ;;  %v655_v10 = vld [vmem:[#allocation2 + $0x18] sm:$0xff]  ;;  %v656_v19 = vld [vmem:[#allocation2 + $0x20] sm:$0xff] }
  0x2a   : > { %368 = vst [vmem:[#allocation2 + $0xd9] sm:$0xff] %v1744_v42  ;;  %369 = vst [vmem:[#allocation2 + $0xe1] sm:$0xff] %v1745_v43  ;;  %v855_v21 = vld [vmem:[#allocation2 + $0x1a] sm:$0xff]  ;;  %v691_v34 = vmul.f32 %v2018_v14, %v655_v10  ;;  %v692_v35 = vmul.f32 %v2018_v14, %v656_v19  ;;  %v856_v40 = vld [vmem:[#allocation2 + $0x22] sm:$0xff]  ;;  %v791_v43 = vmul.f32 %v2020_v15, %v2091_v20 }
  0x2b   : > { %370 = vst [vmem:[#allocation2 + $0xf1] sm:$0xff] %v1748_v44  ;;  %371 = vst [vmem:[#allocation2 + $0xf9] sm:$0xff] %v1749_v45  ;;  %v956_v41 = vld [vmem:[#allocation2 + $0x30] sm:$0xff]  ;;  %v957_v42 = vld [vmem:[#allocation2 + $0x38] sm:$0xff]  ;;  %v792_v44 = vmul.f32 %v2022_v16, %v2091_v20  ;;  %v891_v4 = vmul.f32 %v2095_v26, %v855_v21  ;;  %v892_v5 = vmul.f32 %v2095_v26, %v856_v40 }
  0x2c   : > { %372 = vst [vmem:[#allocation2 + $0x109] sm:$0xff] %v1752_v48  ;;  %373 = vst [vmem:[#allocation2 + $0x111] sm:$0xff] %v1753_v49  ;;  %v623_v45 = vadd.f32 %v591_v8, %v523_v28  ;;  %v992_v47 = vmul.f32 %v2098_v27, %v956_v41  ;;  %v993_v48 = vmul.f32 %v2098_v27, %v957_v42  ;;  %v1156_v49 = vld [vmem:[#allocation2 + $0x32] sm:$0xff]  ;;  %v2132_v3 = vld [vmem:[#allocation2 + $0x48] sm:$0xff] }
  0x2d   : > { %374 = vst [vmem:[#allocation2 + $0x121] sm:$0xff] %v1756_v50  ;;  %375 = vst [vmem:[#allocation2 + $0x129] sm:$0xff] %v1757_v51  ;;  %v1157_v50 = vld [vmem:[#allocation2 + $0x3a] sm:$0xff]  ;;  %v2111_v51 = vrot.slane %v386_v59, %v1993_v6  ;;  %v425_v53 = vmul.f32 %v655_v10, %v2008_v11  ;;  %v426_v54 = vmul.f32 %v656_v19, %v2008_v11  ;;  %v2134_v8 = vld [vmem:[#allocation2 + $0x50] sm:$0xff] }
  0x2e   : > { %376 = vst [vmem:[#allocation2 + $0x139] sm:$0xff] %v1760_v55  ;;  %377 = vst [vmem:[#allocation2 + $0x141] sm:$0xff] %v1761_v56  ;;  %v723_v55 = vadd.f32 %v691_v34, %v623_v45  ;;  %v724_v56 = vadd.f32 %v692_v35, %v624_v46  ;;  %v1192_v7 = vmul.f32 %v2114_v52, %v1156_v49 }
  0x2f   : > { %378 = vst [vmem:[#allocation2 + $0x151] sm:$0xff] %v1764_v57  ;;  %379 = vst [vmem:[#allocation2 + $0x159] sm:$0xff] %v1765_v58  ;;  %v493_v57 = vmul.f32 %v2020_v15, %v2011_v12  ;;  %v494_v58 = vmul.f32 %v2022_v16, %v2011_v12  ;;  %v1092_v60 = vmul.f32 %v2024_v17, %v2111_v51 }
  0x30   : > { %380 = vst [vmem:[#allocation2 + $0x169] sm:$0xff] %v1768_v61  ;;  %381 = vst [vmem:[#allocation2 + $0x171] sm:$0xff] %v1769_v62  ;;  %v1093_v6 = vmul.f32 %v2026_v18, %v2111_v51  ;;  %v1193_v59 = vmul.f32 %v2114_v52, %v1157_v50  ;;  %v823_v61 = vadd.f32 %v791_v43, %v723_v55  ;;  %v2144_v43 = vld [vmem:[#allocation2 + $0x52] sm:$0xff] }
  0x31   : > { %382 = vst [vmem:[#allocation2 + $0x181] sm:$0xff] %v1772_v63  ;;  %383 = vst [vmem:[#allocation2 + $0x189] sm:$0xff] %v1773_v0  ;;  %v824_v62 = vadd.f32 %v792_v44, %v724_v56  ;;  %v525_v63 = vadd.f32 %v493_v57, %v425_v53  ;;  %v526_v0 = vadd.f32 %v494_v58, %v426_v54  ;;  %v2161_v58 = vld [vmem:[%s2807_s2] ss:$0 sm:$0xff] }
  0x32   : > { %v593_v1 = vmul.f32 %v855_v21, %v2014_v13  ;;  %v594_v15 = vmul.f32 %v856_v40, %v2014_v13  ;;  %v693_v16 = vmul.f32 %v956_v41, %v2018_v14  ;;  %v694_v2 = vmul.f32 %v957_v42, %v2018_v14  ;;  %v2142_v40 = vld [vmem:[#allocation2 + $0x4a] sm:$0xff] }
  0x33   : > { %v923_v9 = vadd.f32 %v891_v4, %v823_v61  ;;  %v924_v10 = vadd.f32 %v892_v5, %v824_v62  ;;  %v793_v19 = vmul.f32 %v2024_v17, %v2091_v20  ;;  %v794_v28 = vmul.f32 %v2026_v18, %v2091_v20 }
  0x34   : > { %v625_v33 = vadd.f32 %v593_v1, %v525_v63  ;;  %v626_v21 = vadd.f32 %v594_v15, %v526_v0  ;;  %v893_v34 = vmul.f32 %v1156_v49, %v2095_v26  ;;  %v894_v35 = vmul.f32 %v1157_v50, %v2095_v26 }
  0x35   : > { %v1024_v44 = vadd.f32 %v992_v47, %v923_v9  ;;  %v1025_v45 = vadd.f32 %v993_v48, %v924_v10  ;;  %v994_v4 = vmul.f32 %v2098_v27, %v2132_v3  ;;  %v995_v5 = vmul.f32 %v2098_v27, %v2134_v8 }
  0x36   : > { %v725_v46 = vadd.f32 %v693_v16, %v625_v33  ;;  %v726_v53 = vadd.f32 %v694_v2, %v626_v21  ;;  %v1094_v54 = vmul.f32 %v2031_v22, %v2111_v51  ;;  %v1095_v55 = vmul.f32 %v2033_v23, %v2111_v51 }
  0x37   : > { %v1124_v56 = vadd.f32 %v1092_v60, %v1024_v44  ;;  %v1125_v57 = vadd.f32 %v1093_v6, %v1025_v45  ;;  %v1194_v47 = vmul.f32 %v2114_v52, %v2142_v40  ;;  %v1195_v48 = vmul.f32 %v2114_v52, %v2144_v43 }
  0x38   : > { %v825_v61 = vadd.f32 %v793_v19, %v725_v46  ;;  %v826_v62 = vadd.f32 %v794_v28, %v726_v53  ;;  %v427_v63 = vmul.f32 %v956_v41, %v2008_v11  ;;  %v428_v0 = vmul.f32 %v957_v42, %v2008_v11 }
  0x39   : > { %v1224_v1 = vadd.f32 %v1192_v7, %v1124_v56  ;;  %v1225_v60 = vadd.f32 %v1193_v59, %v1125_v57  ;;  %v495_v6 = vmul.f32 %v2024_v17, %v2011_v12  ;;  %v496_v15 = vmul.f32 %v2026_v18, %v2011_v12  ;;  %v2183_v57 = vld [vmem:[#allocation2 + $0x68] sm:$0xff] }
  0x3a   : > { %v925_v16 = vadd.f32 %v893_v34, %v825_v61  ;;  %v926_v2 = vadd.f32 %v894_v35, %v826_v62  ;;  %v595_v9 = vmul.f32 %v1156_v49, %v2014_v13  ;;  %v596_v10 = vmul.f32 %v1157_v50, %v2014_v13 }
  0x3b   : > { %v1263_v19 = vadd.f32 %v2161_v58, %v1224_v1  ;;  %v1264_v41 = vadd.f32 %v2161_v58, %v1225_v60  ;;  %v527_v28 = vadd.f32 %v495_v6, %v427_v63  ;;  %v528_v42 = vadd.f32 %v496_v15, %v428_v0  ;;  %v2196_v63 = vld [vmem:[#allocation2 + $0x62] sm:$0xff]  ;;  %v2200_v15 = vld [vmem:[#allocation2 + $0x6a] sm:$0xff] }
  0x3c   : > { %v1026_v7 = vadd.f32 %v994_v4, %v925_v16  ;;  %v1027_v59 = vadd.f32 %v995_v5, %v926_v2  ;;  %v695_v17 = vmul.f32 %v2132_v3, %v2018_v14  ;;  %v696_v18 = vmul.f32 %v2134_v8, %v2018_v14  ;;  %v2181_v4 = vld [vmem:[#allocation2 + $0x60] sm:$0xff] }
  0x3d   : > { %v1295_v33 = vmax.f32 %v1263_v19, 0.0  ;;  %v1296_v21 = vmax.f32 %v1264_v41, 0.0  ;;  %v627_v49 = vadd.f32 %v595_v9, %v527_v28  ;;  %v628_v34 = vadd.f32 %v596_v10, %v528_v42 }
  0x3e   : > { %v1126_v50 = vadd.f32 %v1094_v54, %v1026_v7  ;;  %v1127_v35 = vadd.f32 %v1095_v55, %v1027_v59  ;;  %v795_v44 = vmul.f32 %v2031_v22, %v2091_v20  ;;  %v796_v45 = vmul.f32 %v2033_v23, %v2091_v20 }
  0x3f   : > { %v1327_v5 = vmin.f32 %v1295_v33, 6.0  ;;  %v1328_v46 = vmin.f32 %v1296_v21, 6.0  ;;  %v727_v53 = vadd.f32 %v695_v17, %v627_v49  ;;  %v728_v56 = vadd.f32 %v696_v18, %v628_v34 }
  0x40   : > { %v1226_v54 = vadd.f32 %v1194_v47, %v1126_v50  ;;  %v1227_v55 = vadd.f32 %v1195_v48, %v1127_v35  ;;  %v895_v61 = vmul.f32 %v2142_v40, %v2095_v26  ;;  %v896_v62 = vmul.f32 %v2144_v43, %v2095_v26 }
  0x41   : > { %v1777_v0 = vpack.c.bf16 %v1328_v46, %v1327_v5  ;;  %v827_v1 = vadd.f32 %v795_v44, %v727_v53  ;;  %v828_v60 = vadd.f32 %v796_v45, %v728_v56  ;;  %v996_v6 = vmul.f32 %v2098_v27, %v2181_v4  ;;  %v2231_v56 = vld [vmem:[#allocation2 + $0x78] sm:$0xff] }
  0x42   : > { %v1265_v16 = vadd.f32 %v2161_v58, %v1226_v54  ;;  %v1266_v47 = vadd.f32 %v2161_v58, %v1227_v55  ;;  %v997_v48 = vmul.f32 %v2098_v27, %v2183_v57  ;;  %v1096_v2 = vmul.f32 %v2035_v24, %v2111_v51 }
  0x43   : > { %1778 = vst [vmem:[%s2190_s30] sm:$0xff] %v1777_v0   ;;  %v927_v9 = vadd.f32 %v895_v61, %v827_v1  ;;  %v928_v10 = vadd.f32 %v896_v62, %v828_v60  ;;  %v1097_v19 = vmul.f32 %v2037_v25, %v2111_v51  ;;  %v1196_v41 = vmul.f32 %v2114_v52, %v2196_v63  ;;  %v2235_v61 = vld [vmem:[#allocation2 + $0x80] sm:$0xff] }
  0x44   : > { %v1297_v28 = vmax.f32 %v1265_v16, 0.0  ;;  %v1298_v42 = vmax.f32 %v1266_v47, 0.0  ;;  %v1197_v7 = vmul.f32 %v2114_v52, %v2200_v15  ;;  %v429_v59 = vmul.f32 %v2132_v3, %v2008_v11  ;;  %v2244_v60 = vld [vmem:[#allocation2 + $0x7a] sm:$0xff] }
  0x45   : > { %v1028_v17 = vadd.f32 %v996_v6, %v927_v9  ;;  %v1029_v18 = vadd.f32 %v997_v48, %v928_v10  ;;  %v430_v33 = vmul.f32 %v2134_v8, %v2008_v11  ;;  %v497_v21 = vmul.f32 %v2031_v22, %v2011_v12 }
  0x46   : > { %v1329_v49 = vmin.f32 %v1297_v28, 6.0  ;;  %v1330_v34 = vmin.f32 %v1298_v42, 6.0  ;;  %v498_v50 = vmul.f32 %v2033_v23, %v2011_v12  ;;  %v597_v35 = vmul.f32 %v2142_v40, %v2014_v13 }
  0x47   : > { %v1128_v44 = vadd.f32 %v1096_v2, %v1028_v17  ;;  %v1129_v45 = vadd.f32 %v1097_v19, %v1029_v18  ;;  %v529_v3 = vadd.f32 %v497_v21, %v429_v59  ;;  %v598_v5 = vmul.f32 %v2144_v43, %v2014_v13  ;;  %v2250_v2 = vld [vmem:[#allocation2 + $0x82] sm:$0xff] }
  0x48   : > { %v1782_v46 = vpack.c.bf16 %v1330_v34, %v1329_v49  ;;  %v530_v8 = vadd.f32 %v498_v50, %v430_v33  ;;  %v697_v22 = vmul.f32 %v2181_v4, %v2018_v14  ;;  %v698_v53 = vmul.f32 %v2183_v57, %v2018_v14 }
  0x49   : > { %v1228_v23 = vadd.f32 %v1196_v41, %v1128_v44  ;;  %v1229_v54 = vadd.f32 %v1197_v7, %v1129_v45  ;;  %v629_v55 = vadd.f32 %v597_v35, %v529_v3  ;;  %v797_v40 = vmul.f32 %v2035_v24, %v2091_v20 }
  0x4a   : > { %1869 = vst [vmem:[%s2190_s30 + $0x8] sm:$0xff] %v1782_v46   ;;  %v630_v43 = vadd.f32 %v598_v5, %v530_v8  ;;  %v798_v62 = vmul.f32 %v2037_v25, %v2091_v20  ;;  %v897_v0 = vmul.f32 %v2196_v63, %v2095_v26  ;;  %v898_v1 = vmul.f32 %v2200_v15, %v2095_v26 }
  0x4b   : > { %v1267_v6 = vadd.f32 %v2161_v58, %v1228_v23  ;;  %v1268_v16 = vadd.f32 %v2161_v58, %v1229_v54  ;;  %v729_v47 = vadd.f32 %v697_v22, %v629_v55  ;;  %v998_v48 = vmul.f32 %v2098_v27, %v2231_v56  ;;  %v2276_v22 = vld [vmem:[#allocation2 + $0x90] sm:$0xff] }
  0x4c   : > { %v730_v9 = vadd.f32 %v698_v53, %v630_v43  ;;  %v999_v10 = vmul.f32 %v2098_v27, %v2235_v61  ;;  %v1098_v19 = vmul.f32 %v2046_v29, %v2111_v51  ;;  %v1099_v41 = vmul.f32 %v2048_v30, %v2111_v51  ;;  %v2289_v43 = vld [vmem:[#allocation2 + $0x92] sm:$0xff] }
  0x4d   : > { %v1299_v28 = vmax.f32 %v1267_v6, 0.0  ;;  %v1300_v42 = vmax.f32 %v1268_v16, 0.0  ;;  %v829_v7 = vadd.f32 %v797_v40, %v729_v47  ;;  %v1198_v59 = vmul.f32 %v2114_v52, %v2244_v60  ;;  %v2295_v16 = vld [vmem:[#allocation2 + $0x9a] sm:$0xff] }
  0x4e   : > { %v830_v17 = vadd.f32 %v798_v62, %v730_v9  ;;  %v1199_v18 = vmul.f32 %v2114_v52, %v2250_v2  ;;  %v431_v33 = vmul.f32 %v2181_v4, %v2008_v11  ;;  %v432_v21 = vmul.f32 %v2183_v57, %v2008_v11 }
  0x4f   : > { %v1331_v49 = vmin.f32 %v1299_v28, 6.0  ;;  %v1332_v34 = vmin.f32 %v1300_v42, 6.0  ;;  %v929_v50 = vadd.f32 %v897_v0, %v829_v7  ;;  %v499_v35 = vmul.f32 %v2035_v24, %v2011_v12 }
  0x50   : > { %v930_v44 = vadd.f32 %v898_v1, %v830_v17  ;;  %v500_v45 = vmul.f32 %v2037_v25, %v2011_v12  ;;  %v599_v3 = vmul.f32 %v2196_v63, %v2014_v13  ;;  %v600_v4 = vmul.f32 %v2200_v15, %v2014_v13  ;;  %v2282_v63 = vld [vmem:[#allocation2 + $0x98] sm:$0xff] }
  0x51   : > { %v1787_v5 = vpack.c.bf16 %v1332_v34, %v1331_v49  ;;  %v1030_v46 = vadd.f32 %v998_v48, %v929_v50  ;;  %v531_v57 = vadd.f32 %v499_v35, %v431_v33  ;;  %v699_v8 = vmul.f32 %v2231_v56, %v2018_v14 }
  0x52   : > { %v1031_v53 = vadd.f32 %v999_v10, %v930_v44  ;;  %v532_v24 = vadd.f32 %v500_v45, %v432_v21  ;;  %v700_v23 = vmul.f32 %v2235_v61, %v2018_v14  ;;  %v799_v25 = vmul.f32 %v2046_v29, %v2091_v20 }
  0x53   : > { %1870 = vst [vmem:[%s2190_s30 + $0x10] sm:$0xff] %v1787_v5   ;;  %v1130_v15 = vadd.f32 %v1098_v19, %v1030_v46  ;;  %v631_v54 = vadd.f32 %v599_v3, %v531_v57  ;;  %v800_v55 = vmul.f32 %v2048_v30, %v2091_v20  ;;  %v899_v40 = vmul.f32 %v2244_v60, %v2095_v26 }
  0x54   : > { %v1131_v62 = vadd.f32 %v1099_v41, %v1031_v53  ;;  %v632_v0 = vadd.f32 %v600_v4, %v532_v24  ;;  %v900_v1 = vmul.f32 %v2250_v2, %v2095_v26  ;;  %v1000_v6 = vmul.f32 %v2098_v27, %v2276_v22 }
  0x55   : > { %v1230_v47 = vadd.f32 %v1198_v59, %v1130_v15  ;;  %v731_v48 = vadd.f32 %v699_v8, %v631_v54  ;;  %v1001_v9 = vmul.f32 %v2098_v27, %v2282_v63  ;;  %v1100_v10 = vmul.f32 %v2050_v31, %v2111_v51  ;;  %v2331_v54 = vld [vmem:[#allocation2 + $0xb0] sm:$0xff] }
  0x56   : > { %v1231_v19 = vadd.f32 %v1199_v18, %v1131_v62  ;;  %v732_v28 = vadd.f32 %v700_v23, %v632_v0  ;;  %v1101_v41 = vmul.f32 %v2052_v32, %v2111_v51  ;;  %v1200_v42 = vmul.f32 %v2114_v52, %v2289_v43  ;;  %v2325_v23 = vld [vmem:[#allocation2 + $0xa8] sm:$0xff] }
  0x57   : > { %v1269_v7 = vadd.f32 %v2161_v58, %v1230_v47  ;;  %v831_v17 = vadd.f32 %v799_v25, %v731_v48  ;;  %v1201_v59 = vmul.f32 %v2114_v52, %v2295_v16  ;;  %v433_v33 = vmul.f32 %v2231_v56, %v2008_v11 }
  0x58   : > { %v1270_v21 = vadd.f32 %v2161_v58, %v1231_v19  ;;  %v832_v49 = vadd.f32 %v800_v55, %v732_v28  ;;  %v434_v18 = vmul.f32 %v2235_v61, %v2008_v11  ;;  %v501_v34 = vmul.f32 %v2046_v29, %v2011_v12 }
  0x59   : > { %v1301_v50 = vmax.f32 %v1269_v7, 0.0  ;;  %v931_v35 = vadd.f32 %v899_v40, %v831_v17  ;;  %v502_v44 = vmul.f32 %v2048_v30, %v2011_v12  ;;  %v601_v45 = vmul.f32 %v2244_v60, %v2014_v13 }
  0x5a   : > { %v1302_v3 = vmax.f32 %v1270_v21, 0.0  ;;  %v932_v4 = vadd.f32 %v900_v1, %v832_v49  ;;  %v533_v56 = vadd.f32 %v501_v34, %v433_v33  ;;  %v602_v5 = vmul.f32 %v2250_v2, %v2014_v13  ;;  %v2335_v1 = vld [vmem:[#allocation2 + $0xaa] sm:$0xff] }
  0x5b   : > { %v1333_v46 = vmin.f32 %v1301_v50, 6.0  ;;  %v1032_v57 = vadd.f32 %v1000_v6, %v931_v35  ;;  %v534_v61 = vadd.f32 %v502_v44, %v434_v18  ;;  %v701_v29 = vmul.f32 %v2276_v22, %v2018_v14 }
  0x5c   : > { %v1334_v8 = vmin.f32 %v1302_v3, 6.0  ;;  %v1033_v53 = vadd.f32 %v1001_v9, %v932_v4  ;;  %v633_v24 = vadd.f32 %v601_v45, %v533_v56  ;;  %v702_v30 = vmul.f32 %v2282_v63, %v2018_v14 }
  0x5d   : > { %v1132_v60 = vadd.f32 %v1100_v10, %v1032_v57  ;;  %v634_v25 = vadd.f32 %v602_v5, %v534_v61  ;;  %v801_v2 = vmul.f32 %v2050_v31, %v2091_v20  ;;  %v802_v15 = vmul.f32 %v2052_v32, %v2091_v20  ;;  %v2341_v10 = vld [vmem:[#allocation2 + $0xb2] sm:$0xff] }
  0x5e   : > { %v1792_v55 = vpack.c.bf16 %v1334_v8, %v1333_v46  ;;  %v1133_v40 = vadd.f32 %v1101_v41, %v1033_v53  ;;  %v733_v62 = vadd.f32 %v701_v29, %v633_v24  ;;  %v901_v0 = vmul.f32 %v2289_v43, %v2095_v26 }
  0x5f   : > { %v1232_v6 = vadd.f32 %v1200_v42, %v1132_v60  ;;  %v734_v47 = vadd.f32 %v702_v30, %v634_v25  ;;  %v902_v48 = vmul.f32 %v2295_v16, %v2095_v26  ;;  %v1002_v9 = vmul.f32 %v2098_v27, %v2325_v23  ;;  %v2374_v30 = vld [vmem:[#allocation2 + $0xc0] sm:$0xff]  ;;  %v2376_v60 = vld [vmem:[#allocation2 + $0xc8] sm:$0xff] }
  0x60   : > { %1871 = vst [vmem:[%s2190_s30 + $0x18] sm:$0xff] %v1792_v55   ;;  %v1233_v19 = vadd.f32 %v1201_v59, %v1133_v40  ;;  %v833_v28 = vadd.f32 %v801_v2, %v733_v62  ;;  %v1003_v41 = vmul.f32 %v2098_v27, %v2331_v54  ;;  %v1102_v7 = vmul.f32 %v2061_v36, %v2111_v51 }
  0x61   : > { %v1271_v42 = vadd.f32 %v2161_v58, %v1232_v6  ;;  %v834_v17 = vadd.f32 %v802_v15, %v734_v47  ;;  %v1103_v33 = vmul.f32 %v2063_v37, %v2111_v51  ;;  %v1202_v21 = vmul.f32 %v2114_v52, %v2335_v1  ;;  %v2384_v6 = vld [vmem:[#allocation2 + $0xc2] sm:$0xff]  ;;  %v2386_v47 = vld [vmem:[#allocation2 + $0xca] sm:$0xff] }
  0x62   : > { %v1272_v49 = vadd.f32 %v2161_v58, %v1233_v19  ;;  %v933_v18 = vadd.f32 %v901_v0, %v833_v28  ;;  %v1203_v59 = vmul.f32 %v2114_v52, %v2341_v10  ;;  %v435_v34 = vmul.f32 %v2276_v22, %v2008_v11 }
  0x63   : > { %v1303_v50 = vmax.f32 %v1271_v42, 0.0  ;;  %v934_v35 = vadd.f32 %v902_v48, %v834_v17  ;;  %v436_v44 = vmul.f32 %v2282_v63, %v2008_v11  ;;  %v503_v45 = vmul.f32 %v2050_v31, %v2011_v12 }
  0x64   : > { %v1304_v3 = vmax.f32 %v1272_v49, 0.0  ;;  %v1034_v4 = vadd.f32 %v1002_v9, %v933_v18  ;;  %v504_v56 = vmul.f32 %v2052_v32, %v2011_v12  ;;  %v603_v5 = vmul.f32 %v2289_v43, %v2014_v13 }
  0x65   : > { %v1335_v46 = vmin.f32 %v1303_v50, 6.0  ;;  %v1035_v57 = vadd.f32 %v1003_v41, %v934_v35  ;;  %v535_v61 = vadd.f32 %v503_v45, %v435_v34  ;;  %v604_v22 = vmul.f32 %v2295_v16, %v2014_v13 }
  0x66   : > { %v1336_v29 = vmin.f32 %v1304_v3, 6.0  ;;  %v1134_v8 = vadd.f32 %v1102_v7, %v1034_v4  ;;  %v536_v63 = vadd.f32 %v504_v56, %v436_v44  ;;  %v703_v31 = vmul.f32 %v2325_v23, %v2018_v14 }
  0x67   : > { %v1135_v53 = vadd.f32 %v1103_v33, %v1035_v57  ;;  %v635_v24 = vadd.f32 %v603_v5, %v535_v61  ;;  %v704_v32 = vmul.f32 %v2331_v54, %v2018_v14  ;;  %v803_v43 = vmul.f32 %v2061_v36, %v2091_v20 }
  0x68   : > { %v1797_v16 = vpack.c.bf16 %v1336_v29, %v1335_v46  ;;  %v1234_v25 = vadd.f32 %v1202_v21, %v1134_v8  ;;  %v636_v2 = vadd.f32 %v604_v22, %v536_v63  ;;  %v804_v15 = vmul.f32 %v2063_v37, %v2091_v20  ;;  %v2421_v63 = vld [vmem:[#allocation2 + $0xd8] sm:$0xff] }
  0x69   : > { %v1235_v55 = vadd.f32 %v1203_v59, %v1135_v53  ;;  %v735_v40 = vadd.f32 %v703_v31, %v635_v24  ;;  %v903_v62 = vmul.f32 %v2335_v1, %v2095_v26  ;;  %v904_v0 = vmul.f32 %v2341_v10, %v2095_v26  ;;  %v2425_v24 = vld [vmem:[#allocation2 + $0xe0] sm:$0xff] }
  0x6a   : > { %1872 = vst [vmem:[%s2190_s30 + $0x20] sm:$0xff] %v1797_v16   ;;  %v1273_v48 = vadd.f32 %v2161_v58, %v1234_v25  ;;  %v736_v9 = vadd.f32 %v704_v32, %v636_v2  ;;  %v1004_v19 = vmul.f32 %v2098_v27, %v2374_v30  ;;  %v1005_v28 = vmul.f32 %v2098_v27, %v2376_v60  ;;  %v2427_v32 = vld [vmem:[#allocation2 + $0xd9] sm:$0xff] }
  0x6b   : > { %v1274_v41 = vadd.f32 %v2161_v58, %v1235_v55  ;;  %v835_v7 = vadd.f32 %v803_v43, %v735_v40  ;;  %v1104_v42 = vmul.f32 %v2065_v38, %v2111_v51  ;;  %v1105_v17 = vmul.f32 %v2067_v39, %v2111_v51  ;;  %v2429_v43 = vld [vmem:[#allocation2 + $0xe1] sm:$0xff] }
  0x6c   : > { %v1305_v33 = vmax.f32 %v1273_v48, 0.0  ;;  %v836_v21 = vadd.f32 %v804_v15, %v736_v9  ;;  %v1204_v49 = vmul.f32 %v2114_v52, %v2384_v6  ;;  %v1205_v18 = vmul.f32 %v2114_v52, %v2386_v47  ;;  %v2436_v2 = vld [vmem:[#allocation2 + $0xda] sm:$0xff] }
  0x6d   : > { %v1306_v59 = vmax.f32 %v1274_v41, 0.0  ;;  %v935_v34 = vadd.f32 %v903_v62, %v835_v7  ;;  %v437_v50 = vmul.f32 %v2325_v23, %v2008_v11  ;;  %v438_v35 = vmul.f32 %v2331_v54, %v2008_v11  ;;  %v471_v62 = vld [vmem:[#allocation2 + $0xc1] sm:$0xff] }
  0x6e   : > { %v1337_v44 = vmin.f32 %v1305_v33, 6.0  ;;  %v936_v45 = vadd.f32 %v904_v0, %v836_v21  ;;  %v505_v3 = vmul.f32 %v2061_v36, %v2011_v12  ;;  %v506_v4 = vmul.f32 %v2063_v37, %v2011_v12 }
  0x6f   : > { %v1338_v56 = vmin.f32 %v1306_v59, 6.0  ;;  %v1036_v5 = vadd.f32 %v1004_v19, %v935_v34  ;;  %v605_v46 = vmul.f32 %v2335_v1, %v2014_v13  ;;  %v606_v57 = vmul.f32 %v2341_v10, %v2014_v13 }
  0x70   : > { %v1037_v23 = vadd.f32 %v1005_v28, %v936_v45  ;;  %v537_v61 = vadd.f32 %v505_v3, %v437_v50  ;;  %v538_v54 = vadd.f32 %v506_v4, %v438_v35  ;;  %v705_v22 = vmul.f32 %v2374_v30, %v2018_v14  ;;  %v472_v28 = vld [vmem:[#allocation2 + $0xc9] sm:$0xff] }
  0x71   : > { %v1802_v29 = vpack.c.bf16 %v1338_v56, %v1337_v44  ;;  %v1136_v36 = vadd.f32 %v1104_v42, %v1036_v5  ;;  %v706_v37 = vmul.f32 %v2376_v60, %v2018_v14  ;;  %v805_v8 = vmul.f32 %v2065_v38, %v2091_v20  ;;  %v1171_v35 = vld [vmem:[#allocation2 + $0xe2] sm:$0xff] }
  0x72   : > { %v1137_v1 = vadd.f32 %v1105_v17, %v1037_v23  ;;  %v637_v31 = vadd.f32 %v605_v46, %v537_v61  ;;  %v638_v10 = vadd.f32 %v606_v57, %v538_v54  ;;  %v806_v53 = vmul.f32 %v2067_v39, %v2091_v20 }
  0x73   : > { %1873 = vst [vmem:[%s2190_s30 + $0x28] sm:$0xff] %v1802_v29   ;;  %v1236_v16 = vadd.f32 %v1204_v49, %v1136_v36  ;;  %v905_v25 = vmul.f32 %v2384_v6, %v2095_v26  ;;  %v906_v38 = vmul.f32 %v2386_v47, %v2095_v26  ;;  %v1006_v39 = vmul.f32 %v2098_v27, %v2421_v63 }
  0x74   : > { %v1237_v15 = vadd.f32 %v1205_v18, %v1137_v1  ;;  %v737_v55 = vadd.f32 %v705_v22, %v637_v31  ;;  %v738_v40 = vadd.f32 %v706_v37, %v638_v10  ;;  %v1007_v48 = vmul.f32 %v2098_v27, %v2425_v24  ;;  %v2465_v37 = vld [vmem:[#allocation2 + $0xf0] sm:$0xff] }
  0x75   : > { %v1275_v0 = vadd.f32 %v2161_v58, %v1236_v16  ;;  %v1106_v9 = vmul.f32 %v2111_v51, %v2427_v32  ;;  %v1107_v19 = vmul.f32 %v2111_v51, %v2429_v43  ;;  %v1206_v17 = vmul.f32 %v2114_v52, %v2436_v2  ;;  %v2477_v16 = vld [vmem:[#allocation2 + $0xf9] sm:$0xff] }
  0x76   : > { %v1276_v41 = vadd.f32 %v2161_v58, %v1237_v15  ;;  %v837_v7 = vadd.f32 %v805_v8, %v737_v55  ;;  %v838_v42 = vadd.f32 %v806_v53, %v738_v40  ;;  %v439_v21 = vmul.f32 %v2374_v30, %v2008_v11  ;;  %v2469_v8 = vld [vmem:[#allocation2 + $0xf1] sm:$0xff] }
  0x77   : > { %v1307_v33 = vmax.f32 %v1275_v0, 0.0  ;;  %v440_v49 = vmul.f32 %v2376_v60, %v2008_v11  ;;  %v507_v18 = vmul.f32 %v2011_v12, %v471_v62  ;;  %v508_v44 = vmul.f32 %v2011_v12, %v472_v28  ;;  %v2481_v40 = vld [vmem:[#allocation2 + $0xf2] sm:$0xff] }
  0x78   : > { %v1308_v59 = vmax.f32 %v1276_v41, 0.0  ;;  %v937_v34 = vadd.f32 %v905_v25, %v837_v7  ;;  %v938_v50 = vadd.f32 %v906_v38, %v838_v42  ;;  %v607_v4 = vmul.f32 %v2384_v6, %v2014_v13  ;;  %v2493_v7 = vld [vmem:[#allocation2 + $0xfa] sm:$0xff] }
  0x79   : > { %v1339_v45 = vmin.f32 %v1307_v33, 6.0  ;;  %v539_v3 = vadd.f32 %v507_v18, %v439_v21  ;;  %v608_v56 = vmul.f32 %v2386_v47, %v2014_v13  ;;  %v540_v60 = vadd.f32 %v508_v44, %v440_v49  ;;  %v2467_v47 = vld [vmem:[#allocation2 + $0xf8] sm:$0xff] }
  0x7a   : > { %v1340_v30 = vmin.f32 %v1308_v59, 6.0  ;;  %v1038_v5 = vadd.f32 %v1006_v39, %v937_v34  ;;  %v1039_v46 = vadd.f32 %v1007_v48, %v938_v50  ;;  %v1207_v57 = vmul.f32 %v2114_v52, %v1171_v35 }
  0x7b   : > { %v639_v23 = vadd.f32 %v607_v4, %v539_v3  ;;  %v707_v61 = vmul.f32 %v2421_v63, %v2018_v14  ;;  %v708_v54 = vmul.f32 %v2425_v24, %v2018_v14  ;;  %v640_v36 = vadd.f32 %v608_v56, %v540_v60 }
  0x7c   : > { %v1807_v22 = vpack.c.bf16 %v1340_v30, %v1339_v45  ;;  %v1138_v29 = vadd.f32 %v1106_v9, %v1038_v5  ;;  %v1139_v6 = vadd.f32 %v1107_v19, %v1039_v46  ;;  %v807_v31 = vmul.f32 %v2427_v32, %v2091_v20 }
  0x7d   : > { %v739_v1 = vadd.f32 %v707_v61, %v639_v23  ;;  %v808_v10 = vmul.f32 %v2429_v43, %v2091_v20  ;;  %v907_v53 = vmul.f32 %v2436_v2, %v2095_v26  ;;  %v740_v15 = vadd.f32 %v708_v54, %v640_v36  ;;  %v2514_v61 = vld [vmem:[#allocation2 + $0x108] sm:$0xff]  ;;  %v2524_v36 = vld [vmem:[#allocation2 + $0x111] sm:$0xff] }
  0x7e   : > { %1874 = vst [vmem:[%s2190_s30 + $0x30] sm:$0xff] %v1807_v22   ;;  %v1238_v25 = vadd.f32 %v1206_v17, %v1138_v29  ;;  %v1239_v38 = vadd.f32 %v1207_v57, %v1139_v6  ;;  %v908_v55 = vmul.f32 %v1171_v35, %v2095_v26  ;;  %v1008_v62 = vmul.f32 %v2098_v27, %v2465_v37  ;;  %v2522_v6 = vld [vmem:[#allocation2 + $0x109] sm:$0xff] }
  0x7f   : > { %v839_v39 = vadd.f32 %v807_v31, %v739_v1  ;;  %v1009_v0 = vmul.f32 %v2098_v27, %v2467_v47  ;;  %v1108_v48 = vmul.f32 %v2111_v51, %v2469_v8  ;;  %v840_v28 = vadd.f32 %v808_v10, %v740_v15 }
  0x80   : > { %v1277_v9 = vadd.f32 %v2161_v58, %v1238_v25  ;;  %v1278_v19 = vadd.f32 %v2161_v58, %v1239_v38  ;;  %v1109_v41 = vmul.f32 %v2111_v51, %v2477_v16  ;;  %v1208_v17 = vmul.f32 %v2114_v52, %v2481_v40  ;;  %v2531_v25 = vld [vmem:[#allocation2 + $0x10a] sm:$0xff] }
  0x81   : > { %v939_v42 = vadd.f32 %v907_v53, %v839_v39  ;;  %v441_v33 = vmul.f32 %v2421_v63, %v2008_v11  ;;  %v442_v21 = vmul.f32 %v2425_v24, %v2008_v11  ;;  %v940_v59 = vadd.f32 %v908_v55, %v840_v28 }
  0x82   : > { %v1309_v49 = vmax.f32 %v1277_v9, 0.0  ;;  %v1310_v18 = vmax.f32 %v1278_v19, 0.0  ;;  %v509_v34 = vmul.f32 %v2427_v32, %v2011_v12  ;;  %v1209_v44 = vmul.f32 %v2114_v52, %v2493_v7  ;;  %v2543_v19 = vld [vmem:[#allocation2 + $0x112] sm:$0xff] }
  0x83   : > { %v1040_v50 = vadd.f32 %v1008_v62, %v939_v42  ;;  %v510_v45 = vmul.f32 %v2429_v43, %v2011_v12  ;;  %v609_v3 = vmul.f32 %v2436_v2, %v2014_v13  ;;  %v1041_v56 = vadd.f32 %v1009_v0, %v940_v59  ;;  %v2516_v2 = vld [vmem:[#allocation2 + $0x110] sm:$0xff] }
  0x84   : > { %v1341_v63 = vmin.f32 %v1309_v49, 6.0  ;;  %v1342_v4 = vmin.f32 %v1310_v18, 6.0  ;;  %v541_v24 = vadd.f32 %v509_v34, %v441_v33  ;;  %v610_v46 = vmul.f32 %v1171_v35, %v2014_v13 }
  0x85   : > { %v1140_v30 = vadd.f32 %v1108_v48, %v1040_v50  ;;  %v542_v5 = vadd.f32 %v510_v45, %v442_v21  ;;  %v709_v32 = vmul.f32 %v2465_v37, %v2018_v14  ;;  %v1141_v57 = vadd.f32 %v1109_v41, %v1041_v56 }
  0x86   : > { %v1812_v60 = vpack.c.bf16 %v1342_v4, %v1341_v63  ;;  %v641_v23 = vadd.f32 %v609_v3, %v541_v24  ;;  %v710_v43 = vmul.f32 %v2467_v47, %v2018_v14  ;;  %v809_v29 = vmul.f32 %v2469_v8, %v2091_v20 }
  0x87   : > { %v1240_v54 = vadd.f32 %v1208_v17, %v1140_v30  ;;  %v642_v22 = vadd.f32 %v610_v46, %v542_v5  ;;  %v810_v35 = vmul.f32 %v2477_v16, %v2091_v20  ;;  %v1241_v1 = vadd.f32 %v1209_v44, %v1141_v57  ;;  %v2565_v46 = vld [vmem:[#allocation2 + $0x120] sm:$0xff] }
  0x88   : > { %1875 = vst [vmem:[%s2190_s30 + $0x38] sm:$0xff] %v1812_v60   ;;  %v741_v31 = vadd.f32 %v709_v32, %v641_v23  ;;  %v909_v10 = vmul.f32 %v2481_v40, %v2095_v26  ;;  %v910_v53 = vmul.f32 %v2493_v7, %v2095_v26  ;;  %v1010_v55 = vmul.f32 %v2098_v27, %v2514_v61  ;;  %v2567_v32 = vld [vmem:[#allocation2 + $0x128] sm:$0xff] }
  0x89   : > { %v1279_v38 = vadd.f32 %v2161_v58, %v1240_v54  ;;  %v742_v15 = vadd.f32 %v710_v43, %v642_v22  ;;  %v1011_v39 = vmul.f32 %v2098_v27, %v2516_v2  ;;  %v1280_v62 = vadd.f32 %v2161_v58, %v1241_v1  ;;  %v2573_v23 = vld [vmem:[#allocation2 + $0x121] sm:$0xff]  ;;  %v2575_v43 = vld [vmem:[#allocation2 + $0x129] sm:$0xff] }
  0x8a   : > { %v841_v0 = vadd.f32 %v809_v29, %v741_v31  ;;  %v1110_v48 = vmul.f32 %v2111_v51, %v2522_v6  ;;  %v1111_v9 = vmul.f32 %v2111_v51, %v2524_v36  ;;  %v1210_v42 = vmul.f32 %v2114_v52, %v2531_v25  ;;  %v2582_v1 = vld [vmem:[#allocation2 + $0x122] sm:$0xff] }
  0x8b   : > { %v1311_v28 = vmax.f32 %v1279_v38, 0.0  ;;  %v842_v41 = vadd.f32 %v810_v35, %v742_v15  ;;  %v443_v17 = vmul.f32 %v2465_v37, %v2008_v11  ;;  %v1312_v33 = vmax.f32 %v1280_v62, 0.0 }
  0x8c   : > { %v941_v21 = vadd.f32 %v909_v10, %v841_v0  ;;  %v444_v49 = vmul.f32 %v2467_v47, %v2008_v11  ;;  %v511_v18 = vmul.f32 %v2469_v8, %v2011_v12  ;;  %v1211_v50 = vmul.f32 %v2114_v52, %v2543_v19  ;;  %v2593_v0 = vld [vmem:[#allocation2 + $0x12a] sm:$0xff] }
  0x8d   : > { %v1343_v59 = vmin.f32 %v1311_v28, 6.0  ;;  %v942_v34 = vadd.f32 %v910_v53, %v842_v41  ;;  %v512_v44 = vmul.f32 %v2477_v16, %v2011_v12  ;;  %v1344_v45 = vmin.f32 %v1312_v33, 6.0 }
  0x8e   : > { %v1042_v3 = vadd.f32 %v1010_v55, %v941_v21  ;;  %v543_v63 = vadd.f32 %v511_v18, %v443_v17  ;;  %v611_v37 = vmul.f32 %v2481_v40, %v2014_v13  ;;  %v612_v8 = vmul.f32 %v2493_v7, %v2014_v13 }
  0x8f   : > { %v1043_v4 = vadd.f32 %v1011_v39, %v942_v34  ;;  %v544_v47 = vadd.f32 %v512_v44, %v444_v49  ;;  %v711_v56 = vmul.f32 %v2514_v61, %v2018_v14  ;;  %v1817_v24 = vpack.c.bf16 %v1344_v45, %v1343_v59 }
  0x90   : > { %v1142_v30 = vadd.f32 %v1110_v48, %v1042_v3  ;;  %v643_v5 = vadd.f32 %v611_v37, %v543_v63  ;;  %v712_v16 = vmul.f32 %v2516_v2, %v2018_v14  ;;  %v811_v57 = vmul.f32 %v2522_v6, %v2091_v20 }
  0x91   : > { %v1143_v40 = vadd.f32 %v1111_v9, %v1043_v4  ;;  %v644_v60 = vadd.f32 %v612_v8, %v544_v47  ;;  %v812_v7 = vmul.f32 %v2524_v36, %v2091_v20  ;;  %1876 = vst [vmem:[%s2190_s30 + $0x40] sm:$0xff] %v1817_v24   ;;  %v911_v29 = vmul.f32 %v2531_v25, %v2095_v26  ;;  %v2616_v8 = vld [vmem:[#allocation2 + $0x138] sm:$0xff] }
  0x92   : > { %v1242_v54 = vadd.f32 %v1210_v42, %v1142_v30  ;;  %v743_v22 = vadd.f32 %v711_v56, %v643_v5  ;;  %v912_v35 = vmul.f32 %v2543_v19, %v2095_v26  ;;  %v1012_v53 = vmul.f32 %v2098_v27, %v2565_v46  ;;  %v2620_v5 = vld [vmem:[#allocation2 + $0x140] sm:$0xff] }
  0x93   : > { %v1243_v31 = vadd.f32 %v1211_v50, %v1143_v40  ;;  %v744_v10 = vadd.f32 %v712_v16, %v644_v60  ;;  %v1013_v38 = vmul.f32 %v2098_v27, %v2567_v32  ;;  %v1112_v39 = vmul.f32 %v2111_v51, %v2573_v23 }
  0x94   : > { %v1281_v15 = vadd.f32 %v2161_v58, %v1242_v54  ;;  %v843_v55 = vadd.f32 %v811_v57, %v743_v22  ;;  %v1113_v62 = vmul.f32 %v2111_v51, %v2575_v43  ;;  %v1212_v28 = vmul.f32 %v2114_v52, %v2582_v1  ;;  %v2630_v54 = vld [vmem:[#allocation2 + $0x13a] sm:$0xff] }
  0x95   : > { %v1282_v48 = vadd.f32 %v2161_v58, %v1243_v31  ;;  %v844_v9 = vadd.f32 %v812_v7, %v744_v10  ;;  %v445_v41 = vmul.f32 %v2514_v61, %v2008_v11  ;;  %v446_v33 = vmul.f32 %v2516_v2, %v2008_v11  ;;  %v2628_v7 = vld [vmem:[#allocation2 + $0x141] sm:$0xff] }
  0x96   : > { %v1313_v42 = vmax.f32 %v1281_v15, 0.0  ;;  %v943_v17 = vadd.f32 %v911_v29, %v843_v55  ;;  %v513_v21 = vmul.f32 %v2522_v6, %v2011_v12  ;;  %v1213_v59 = vmul.f32 %v2114_v52, %v2593_v0 }
  0x97   : > { %v1314_v49 = vmax.f32 %v1282_v48, 0.0  ;;  %v944_v18 = vadd.f32 %v912_v35, %v844_v9  ;;  %v514_v34 = vmul.f32 %v2524_v36, %v2011_v12  ;;  %v613_v61 = vmul.f32 %v2531_v25, %v2014_v13 }
  0x98   : > { %v1345_v50 = vmin.f32 %v1313_v42, 6.0  ;;  %v1044_v44 = vadd.f32 %v1012_v53, %v943_v17  ;;  %v545_v45 = vadd.f32 %v513_v21, %v445_v41  ;;  %v614_v6 = vmul.f32 %v2543_v19, %v2014_v13  ;;  %v2622_v19 = vld [vmem:[#allocation2 + $0x139] sm:$0xff]  ;;  %v1179_v21 = vld [vmem:[#allocation2 + $0x142] sm:$0xff] }
  0x99   : > { %v1346_v3 = vmin.f32 %v1314_v49, 6.0  ;;  %v1045_v63 = vadd.f32 %v1013_v38, %v944_v18  ;;  %v546_v2 = vadd.f32 %v514_v34, %v446_v33  ;;  %v713_v47 = vmul.f32 %v2565_v46, %v2018_v14 }
  0x9a   : > { %v1144_v37 = vadd.f32 %v1112_v39, %v1044_v44  ;;  %v645_v4 = vadd.f32 %v613_v61, %v545_v45  ;;  %v714_v36 = vmul.f32 %v2567_v32, %v2018_v14  ;;  %v813_v30 = vmul.f32 %v2573_v23, %v2091_v20 }
  0x9b   : > { %v1822_v56 = vpack.c.bf16 %v1346_v3, %v1345_v50  ;;  %v1145_v24 = vadd.f32 %v1113_v62, %v1045_v63  ;;  %v646_v25 = vadd.f32 %v614_v6, %v546_v2  ;;  %v814_v60 = vmul.f32 %v2575_v43, %v2091_v20 }
  0x9c   : > { %v1244_v16 = vadd.f32 %v1212_v28, %v1144_v37  ;;  %v745_v40 = vadd.f32 %v713_v47, %v645_v4  ;;  %v913_v57 = vmul.f32 %v2582_v1, %v2095_v26  ;;  %v914_v35 = vmul.f32 %v2593_v0, %v2095_v26  ;;  %v2664_v37 = vld [vmem:[#allocation2 + $0x150] sm:$0xff] }
  0x9d   : > { %1877 = vst [vmem:[%s2190_s30 + $0x48] sm:$0xff] %v1822_v56   ;;  %v1245_v22 = vadd.f32 %v1213_v59, %v1145_v24  ;;  %v746_v29 = vadd.f32 %v714_v36, %v646_v25  ;;  %v1014_v31 = vmul.f32 %v2098_v27, %v2616_v8  ;;  %v1015_v38 = vmul.f32 %v2098_v27, %v2620_v5  ;;  %v2672_v56 = vld [vmem:[#allocation2 + $0x151] sm:$0xff] }
  0x9e   : > { %v1283_v10 = vadd.f32 %v2161_v58, %v1244_v16  ;;  %v845_v53 = vadd.f32 %v813_v30, %v745_v40  ;;  %v1114_v15 = vmul.f32 %v2111_v51, %v2622_v19  ;;  %v1115_v62 = vmul.f32 %v2111_v51, %v2628_v7  ;;  %v2677_v40 = vld [vmem:[#allocation2 + $0x159] sm:$0xff] }
  0x9f   : > { %v1284_v55 = vadd.f32 %v2161_v58, %v1245_v22  ;;  %v846_v39 = vadd.f32 %v814_v60, %v746_v29  ;;  %v1214_v48 = vmul.f32 %v2114_v52, %v2630_v54  ;;  %v447_v41 = vmul.f32 %v2565_v46, %v2008_v11  ;;  %v2682_v60 = vld [vmem:[%s2807_s2] ss:$0 sm:$0xff] }
  0xa0   : > { %v1315_v9 = vmax.f32 %v1283_v10, 0.0  ;;  %v945_v28 = vadd.f32 %v913_v57, %v845_v53  ;;  %v448_v42 = vmul.f32 %v2567_v32, %v2008_v11  ;;  %v515_v58 = vmul.f32 %v2573_v23, %v2011_v12 }
  0xa1   : > { %v1316_v17 = vmax.f32 %v1284_v55, 0.0  ;;  %v946_v33 = vadd.f32 %v914_v35, %v846_v39  ;;  %v516_v49 = vmul.f32 %v2575_v43, %v2011_v12  ;;  %v615_v34 = vmul.f32 %v2582_v1, %v2014_v13 }
  0xa2   : > { %v1347_v18 = vmin.f32 %v1315_v9, 6.0  ;;  %v1046_v59 = vadd.f32 %v1014_v31, %v945_v28  ;;  %v616_v46 = vmul.f32 %v2593_v0, %v2014_v13  ;;  %v547_v32 = vadd.f32 %v515_v58, %v447_v41  ;;  %v2666_v0 = vld [vmem:[#allocation2 + $0x158] sm:$0xff] }
  0xa3   : > { %v1348_v50 = vmin.f32 %v1316_v17, 6.0  ;;  %v1047_v44 = vadd.f32 %v1015_v38, %v946_v33  ;;  %v548_v45 = vadd.f32 %v516_v49, %v448_v42  ;;  %v1215_v3 = vmul.f32 %v2114_v52, %v1179_v21  ;;  %v1181_v42 = vld [vmem:[#allocation2 + $0x15a] sm:$0xff] }
  0xa4   : > { %v1146_v61 = vadd.f32 %v1114_v15, %v1046_v59  ;;  %v715_v23 = vmul.f32 %v2616_v8, %v2018_v14  ;;  %v716_v43 = vmul.f32 %v2620_v5, %v2018_v14  ;;  %v647_v1 = vadd.f32 %v615_v34, %v547_v32  ;;  %v1180_v15 = vld [vmem:[#allocation2 + $0x152] sm:$0xff] }
  0xa5   : > { %v1827_v63 = vpack.c.bf16 %v1348_v50, %v1347_v18  ;;  %v1147_v2 = vadd.f32 %v1115_v62, %v1047_v44  ;;  %v648_v6 = vadd.f32 %v616_v46, %v548_v45  ;;  %v815_v47 = vmul.f32 %v2622_v19, %v2091_v20 }
  0xa6   : > { %v1246_v4 = vadd.f32 %v1214_v48, %v1146_v61  ;;  %v816_v36 = vmul.f32 %v2628_v7, %v2091_v20  ;;  %v747_v25 = vadd.f32 %v715_v23, %v647_v1  ;;  %v915_v16 = vmul.f32 %v2630_v54, %v2095_v26 }
  0xa7   : > { %1878 = vst [vmem:[%s2190_s30 + $0x50] sm:$0xff] %v1827_v63   ;;  %v1247_v24 = vadd.f32 %v1215_v3, %v1147_v2  ;;  %v748_v30 = vadd.f32 %v716_v43, %v648_v6  ;;  %v916_v22 = vmul.f32 %v1179_v21, %v2095_v26  ;;  %v1016_v29 = vmul.f32 %v2098_v27, %v2664_v37  ;;  %v2710_v3 = vld [vmem:[#allocation2 + $0x168] sm:$0xff] }
  0xa8   : > { %v1285_v57 = vadd.f32 %v2682_v60, %v1246_v4  ;;  %v1017_v35 = vmul.f32 %v2098_v27, %v2666_v0  ;;  %v847_v10 = vadd.f32 %v815_v47, %v747_v25  ;;  %v1116_v38 = vmul.f32 %v2111_v51, %v2672_v56  ;;  %v2720_v2 = vld [vmem:[#allocation2 + $0x169] sm:$0xff] }
  0xa9   : > { %v1286_v31 = vadd.f32 %v2682_v60, %v1247_v24  ;;  %v848_v53 = vadd.f32 %v816_v36, %v748_v30  ;;  %v1117_v39 = vmul.f32 %v2111_v51, %v2677_v40  ;;  %v449_v62 = vmul.f32 %v2616_v8, %v2008_v11  ;;  %v2724_v36 = vld [vmem:[#allocation2 + $0x171] sm:$0xff] }
  0xaa   : > { %v1317_v55 = vmax.f32 %v1285_v57, 0.0  ;;  %v450_v48 = vmul.f32 %v2620_v5, %v2008_v11  ;;  %v947_v28 = vadd.f32 %v915_v16, %v847_v10  ;;  %v517_v17 = vmul.f32 %v2622_v19, %v2011_v12 }
  0xab   : > { %v1318_v9 = vmax.f32 %v1286_v31, 0.0  ;;  %v948_v41 = vadd.f32 %v916_v22, %v848_v53  ;;  %v1216_v58 = vmul.f32 %v2114_v52, %v1180_v15  ;;  %v518_v49 = vmul.f32 %v2628_v7, %v2011_v12  ;;  %v1182_v31 = vld [vmem:[#allocation2 + $0x16a] sm:$0xff] }
  0xac   : > { %v1349_v33 = vmin.f32 %v1317_v55, 6.0  ;;  %v617_v18 = vmul.f32 %v2630_v54, %v2014_v13  ;;  %v1048_v59 = vadd.f32 %v1016_v29, %v947_v28  ;;  %v549_v5 = vadd.f32 %v517_v17, %v449_v62  ;;  %v2712_v54 = vld [vmem:[#allocation2 + $0x170] sm:$0xff] }
  0xad   : > { %v1350_v8 = vmin.f32 %v1318_v9, 6.0  ;;  %v1049_v34 = vadd.f32 %v1017_v35, %v948_v41  ;;  %v1217_v46 = vmul.f32 %v2114_v52, %v1181_v42  ;;  %v550_v50 = vadd.f32 %v518_v49, %v450_v48  ;;  %v1183_v9 = vld [vmem:[#allocation2 + $0x172] sm:$0xff] }
  0xae   : > { %v618_v44 = vmul.f32 %v1179_v21, %v2014_v13  ;;  %v717_v19 = vmul.f32 %v2664_v37, %v2018_v14  ;;  %v1148_v45 = vadd.f32 %v1116_v38, %v1048_v59  ;;  %v649_v7 = vadd.f32 %v617_v18, %v549_v5 }
  0xaf   : > { %v1832_v32 = vpack.c.bf16 %v1350_v8, %v1349_v33  ;;  %v1149_v61 = vadd.f32 %v1117_v39, %v1049_v34  ;;  %v718_v43 = vmul.f32 %v2666_v0, %v2018_v14  ;;  %v817_v63 = vmul.f32 %v2672_v56, %v2091_v20 }
  0xb0   : > { %v650_v23 = vadd.f32 %v618_v44, %v550_v50  ;;  %v818_v21 = vmul.f32 %v2677_v40, %v2091_v20  ;;  %v1248_v1 = vadd.f32 %v1216_v58, %v1148_v45  ;;  %v749_v4 = vadd.f32 %v717_v19, %v649_v7  ;;  %v1084_v7 = vld [vmem:[#allocation2 + $0x181] sm:$0xff] }
  0xb1   : > { %1879 = vst [vmem:[%s2190_s30 + $0x58] sm:$0xff] %v1832_v32   ;;  %v1249_v6 = vadd.f32 %v1217_v46, %v1149_v61  ;;  %v917_v47 = vmul.f32 %v1180_v15, %v2095_v26  ;;  %v918_v25 = vmul.f32 %v1181_v42, %v2095_v26  ;;  %v1018_v30 = vmul.f32 %v2098_v27, %v2710_v3  ;;  %v985_v61 = vld [vmem:[#allocation2 + $0x188] sm:$0xff] }
  0xb2   : > { %v750_v24 = vadd.f32 %v718_v43, %v650_v23  ;;  %v1019_v16 = vmul.f32 %v2098_v27, %v2712_v54  ;;  %v1287_v57 = vadd.f32 %v2682_v60, %v1248_v1  ;;  %v849_v29 = vadd.f32 %v817_v63, %v749_v4 }
  0xb3   : > { %v1288_v22 = vadd.f32 %v2682_v60, %v1249_v6  ;;  %v1118_v35 = vmul.f32 %v2111_v51, %v2720_v2  ;;  %v1119_v53 = vmul.f32 %v2111_v51, %v2724_v36  ;;  %v451_v38 = vmul.f32 %v2664_v37, %v2008_v11 }
  0xb4   : > { %v850_v10 = vadd.f32 %v818_v21, %v750_v24  ;;  %v452_v55 = vmul.f32 %v2666_v0, %v2008_v11  ;;  %v1319_v39 = vmax.f32 %v1287_v57, 0.0  ;;  %v949_v48 = vadd.f32 %v917_v47, %v849_v29  ;;  %v1085_v21 = vld [vmem:[#allocation2 + $0x189] sm:$0xff] }
  0xb5   : > { %v1320_v62 = vmax.f32 %v1288_v22, 0.0  ;;  %v519_v28 = vmul.f32 %v2672_v56, %v2011_v12  ;;  %v1218_v17 = vmul.f32 %v2114_v52, %v1182_v31  ;;  %v520_v33 = vmul.f32 %v2677_v40, %v2011_v12  ;;  %v984_v40 = vld [vmem:[#allocation2 + $0x180] sm:$0xff] }
  0xb6   : > { %v950_v41 = vadd.f32 %v918_v25, %v850_v10  ;;  %v619_v58 = vmul.f32 %v1180_v15, %v2014_v13  ;;  %v1351_v49 = vmin.f32 %v1319_v39, 6.0  ;;  %v1050_v18 = vadd.f32 %v1018_v30, %v949_v48  ;;  %v1184_v48 = vld [vmem:[#allocation2 + $0x182] sm:$0xff] }
  0xb7   : > { %v1352_v37 = vmin.f32 %v1320_v62, 6.0  ;;  %v551_v8 = vadd.f32 %v519_v28, %v451_v38  ;;  %v1219_v59 = vmul.f32 %v2114_v52, %v1183_v9  ;;  %v552_v34 = vadd.f32 %v520_v33, %v452_v55 }
  0xb8   : > { %v1051_v0 = vadd.f32 %v1019_v16, %v950_v41  ;;  %v620_v5 = vmul.f32 %v1181_v42, %v2014_v13  ;;  %v1150_v46 = vadd.f32 %v1118_v35, %v1050_v18  ;;  %v719_v44 = vmul.f32 %v2710_v3, %v2018_v14 }
  0xb9   : > { %v1837_v56 = vpack.c.bf16 %v1352_v37, %v1351_v49  ;;  %v651_v50 = vadd.f32 %v619_v58, %v551_v8  ;;  %v720_v32 = vmul.f32 %v2712_v54, %v2018_v14  ;;  %v819_v45 = vmul.f32 %v2720_v2, %v2091_v20  ;;  %v1185_v58 = vld [vmem:[#allocation2 + $0x18a] sm:$0xff] }
  0xba   : > { %v1151_v19 = vadd.f32 %v1119_v53, %v1051_v0  ;;  %v652_v15 = vadd.f32 %v620_v5, %v552_v34  ;;  %v1250_v23 = vadd.f32 %v1218_v17, %v1150_v46  ;;  %v820_v43 = vmul.f32 %v2724_v36, %v2091_v20 }
  0xbb   : > { %1880 = vst [vmem:[%s2190_s30 + $0x60] sm:$0xff] %v1837_v56   ;;  %v751_v42 = vadd.f32 %v719_v44, %v651_v50  ;;  %v919_v63 = vmul.f32 %v1182_v31, %v2095_v26  ;;  %v920_v4 = vmul.f32 %v1183_v9, %v2095_v26  ;;  %v1020_v47 = vmul.f32 %v2098_v27, %v984_v40  ;;  %v1086_v44 = vld [vmem:[#allocation2 + $0x199] sm:$0xff] }
  0xbc   : > { %v1251_v1 = vadd.f32 %v1219_v59, %v1151_v19  ;;  %v752_v6 = vadd.f32 %v720_v32, %v652_v15  ;;  %v1289_v24 = vadd.f32 %v2682_v60, %v1250_v23  ;;  %v1021_v30 = vmul.f32 %v2098_v27, %v985_v61  ;;  %v1910_v15 = vld [vmem:[#allocation2] sm:$0xff] }
  0xbd   : > { %v851_v25 = vadd.f32 %v819_v45, %v751_v42  ;;  %v1120_v16 = vmul.f32 %v2111_v51, %v1084_v7  ;;  %v1121_v29 = vmul.f32 %v2111_v51, %v1085_v21  ;;  %v453_v35 = vmul.f32 %v2710_v3, %v2008_v11  ;;  %v1087_v45 = vld [vmem:[#allocation2 + $0x1a1] sm:$0xff] }
  0xbe   : > { %v1290_v57 = vadd.f32 %v2682_v60, %v1251_v1  ;;  %v852_v22 = vadd.f32 %v820_v43, %v752_v6  ;;  %v1321_v10 = vmax.f32 %v1289_v24, 0.0  ;;  %v454_v38 = vmul.f32 %v2712_v54, %v2008_v11  ;;  %v1186_v6 = vld [vmem:[#allocation2 + $0x19a] sm:$0xff]  ;;  %v1187_v24 = vld [vmem:[#allocation2 + $0x1a2] sm:$0xff] }
  0xbf   : > { %v951_v53 = vadd.f32 %v919_v63, %v851_v25  ;;  %v521_v55 = vmul.f32 %v2720_v2, %v2011_v12  ;;  %v522_v28 = vmul.f32 %v2724_v36, %v2011_v12  ;;  %v621_v41 = vmul.f32 %v1182_v31, %v2014_v13 }
  0xc0   : > { %v1322_v39 = vmax.f32 %v1290_v57, 0.0  ;;  %v952_v62 = vadd.f32 %v920_v4, %v852_v22  ;;  %v1353_v17 = vmin.f32 %v1321_v10, 6.0  ;;  %v622_v49 = vmul.f32 %v1183_v9, %v2014_v13 }
  0xc1   : > { %v1052_v33 = vadd.f32 %v1020_v47, %v951_v53  ;;  %v553_v3 = vadd.f32 %v521_v55, %v453_v35  ;;  %v554_v54 = vadd.f32 %v522_v28, %v454_v38  ;;  %v721_v2 = vmul.f32 %v984_v40, %v2018_v14 }
  0xc2   : > { %v1354_v37 = vmin.f32 %v1322_v39, 6.0  ;;  %v1053_v11 = vadd.f32 %v1021_v30, %v952_v62  ;;  %v1220_v8 = vmul.f32 %v2114_v52, %v1184_v48  ;;  %v722_v12 = vmul.f32 %v985_v61, %v2018_v14 }
  0xc3   : > { %v1152_v18 = vadd.f32 %v1120_v16, %v1052_v33  ;;  %v653_v0 = vadd.f32 %v621_v41, %v553_v3  ;;  %v1221_v59 = vmul.f32 %v2114_v52, %v1185_v58  ;;  %v654_v34 = vadd.f32 %v622_v49, %v554_v54 }
  0xc4   : > { %v1842_v36 = vpack.c.bf16 %v1354_v37, %v1353_v17  ;;  %v1153_v31 = vadd.f32 %v1121_v29, %v1053_v11  ;;  %v821_v13 = vmul.f32 %v1084_v7, %v2091_v20  ;;  %v822_v50 = vmul.f32 %v1085_v21, %v2091_v20 }
  0xc5   : > { %v1252_v5 = vadd.f32 %v1220_v8, %v1152_v18  ;;  %v753_v56 = vadd.f32 %v721_v2, %v653_v0  ;;  %v754_v46 = vadd.f32 %v722_v12, %v654_v34  ;;  %v921_v14 = vmul.f32 %v1184_v48, %v2095_v26 }
  0xc6   : > { %1881 = vst [vmem:[%s2190_s30 + $0x68] sm:$0xff] %v1842_v36   ;;  %v1253_v9 = vadd.f32 %v1221_v59, %v1153_v31  ;;  %v1022_v32 = vmul.f32 %v1910_v15, %v2098_v27  ;;  %v922_v7 = vmul.f32 %v1185_v58, %v2095_v26  ;;  %v1122_v63 = vmul.f32 %v2111_v51, %v1086_v44 }
  0xc7   : > { %v1291_v40 = vadd.f32 %v2682_v60, %v1252_v5  ;;  %v853_v19 = vadd.f32 %v821_v13, %v753_v56  ;;  %v854_v23 = vadd.f32 %v822_v50, %v754_v46  ;;  %v1123_v1 = vmul.f32 %v2111_v51, %v1087_v45 }
  0xc8   : > { %v1292_v61 = vadd.f32 %v2682_v60, %v1253_v9  ;;  %v1222_v16 = vmul.f32 %v2114_v52, %v1186_v6  ;;  %v1223_v22 = vmul.f32 %v2114_v52, %v1187_v24 }
  0xc9   : > { %v1323_v42 = vmax.f32 %v1291_v40, 0.0  ;;  %v953_v43 = vadd.f32 %v921_v14, %v853_v19  ;;  %v954_v21 = vadd.f32 %v922_v7, %v854_v23 }
  0xca   : > { %v1324_v20 = vmax.f32 %v1292_v61, 0.0 }
  0xcb   : > { %v1355_v4 = vmin.f32 %v1323_v42, 6.0  ;;  %v1054_v47 = vadd.f32 %v1022_v32, %v953_v43  ;;  %v1055_v25 = vadd.f32 %v1022_v32, %v954_v21 }
  0xcc   : > { %v1356_v27 = vmin.f32 %v1324_v20, 6.0 }
  0xcd   : > { %v1154_v30 = vadd.f32 %v1122_v63, %v1054_v47  ;;  %v1155_v57 = vadd.f32 %v1123_v1, %v1055_v25 }
  0xce   : > { %v1847_v26 = vpack.c.bf16 %v1356_v27, %v1355_v4 }
  0xcf   : > { %v1254_v29 = vadd.f32 %v1222_v16, %v1154_v30  ;;  %v1255_v35 = vadd.f32 %v1223_v22, %v1155_v57 }
  0xd0   : > { %1882 = vst [vmem:[%s2190_s30 + $0x70] sm:$0xff] %v1847_v26  }
  0xd1   : > { %v1293_v10 = vadd.f32 %v2682_v60, %v1254_v29  ;;  %v1294_v51 = vadd.f32 %v2682_v60, %v1255_v35 }
  0xd3   : > { %v1325_v53 = vmax.f32 %v1293_v10, 0.0  ;;  %v1326_v38 = vmax.f32 %v1294_v51, 0.0 }
  0xd5   : > { %v1357_v55 = vmin.f32 %v1325_v53, 6.0  ;;  %v1358_v39 = vmin.f32 %v1326_v38, 6.0 }
  0xd7   : > { %v1852_v62 = vpack.c.bf16 %v1358_v39, %v1357_v55 }
  0xd9   : > { %1883 = vst [vmem:[%s2190_s30 + $0x78] sm:$0xff] %v1852_v62  }
  0xda PF: > { %s13_s14 = sadd.s32 1, %s1933_s14   ;;  %s2809_s12 = smov %s1929_s13 }
  0xdb   : > { %p10_p5 = scmp.ge.s32.totalorder %s13_s14, 4   ;;  %s2810_s13 = smov %s2812_s15 }
  0xdd   :  { %12 = sbr.rel (!%p10_p5) target bundleno = 2 (0x2), region = 70 }

</bundles_post_ra>
